<compile_context>
chip_gen: v5e
topology: v5e:2x2
jax: 0.10.0
libtpu: 0.0.40
codegen_flags: <defaults>
</compile_context>

<pallas_src>
import math
from functools import partial

import jax
import jax.numpy as jnp
from jax import lax
from jax.experimental import pallas as pl
from jax.experimental.pallas import tpu as pltpu


_NEG_INF = -1e30


def _attention_kernel(x_ref, wqkv_ref, bqkv_ref, wo_ref, bo_ref, *refs,
                      num_heads, head_size, hidden, seq, seq_pad, vis,
                      compute_dtype, exp_dtype):
    """One (batch, head) grid step of multi-head self-attention.

    x_ref     : (1, S_pad, H)           input hidden states (compute_dtype)
    wqkv_ref  : (3H, H)  (out, in)      fused Q/K/V weight, Q part pre-scaled
    bqkv_ref  : (3H, 1)  f32            fused Q/K/V bias, Q part pre-scaled
    wo_ref    : (H, H)   (in, out)      output projection weight
    bo_ref    : (1, H)   f32            output projection bias
    refs      : out (1,S_pad,H) [+ probs (1,1,S_pad,S_pad) if vis]
                + qkv scratch (3*nH, d, S_pad) + ctx scratch (nH, d, S_pad)
    """
    if vis:
        out_ref, probs_ref, qkv_scr, ctx_scr = refs
    else:
        out_ref, qkv_scr, ctx_scr = refs
        probs_ref = None

    h = pl.program_id(1)

    # ---- first head of this batch element: fused QKV projection -------------
    @pl.when(h == 0)
    def _():
        x = x_ref[0]                                            # (S_pad, H)
        # (3H,H) . (S_pad,H)^T  -> (3H, S_pad); f32 accumulation on the MXU.
        qkv_t = lax.dot_general(wqkv_ref[...], x, (((1,), (1,)), ((), ())),
                                preferred_element_type=jnp.float32)
        qkv_t = qkv_t + bqkv_ref[...]                           # bias, f32
        qkv_scr[...] = qkv_t.astype(qkv_scr.dtype).reshape(
            3 * num_heads, head_size, seq_pad)                  # head-major

    # ---- per-head attention (all dynamic indices on the leading dim) --------
    q_t = qkv_scr[h]                        # (d, S_pad)  == Q_scaled^T
    k_t = qkv_scr[num_heads + h]            # (d, S_pad)  == K^T
    v_t = qkv_scr[2 * num_heads + h]        # (d, S_pad)  == V^T

    q = jnp.transpose(q_t)                  # (S_pad, d), small XLU transpose
    scores = jnp.dot(q, k_t, preferred_element_type=jnp.float32)  # (S_pad,S_pad)

    if seq_pad != seq:                      # mask padded key columns
        col = lax.broadcasted_iota(jnp.int32, (1, seq_pad), 1)
        scores = jnp.where(col < seq, scores, _NEG_INF)

    # numerically-stable softmax; reciprocal goes to the (idle) EUP slot
    m = jnp.max(scores, axis=-1, keepdims=True)
    e = jnp.exp((scores - m).astype(exp_dtype)).astype(jnp.float32)
    denom = jnp.sum(e, axis=-1, keepdims=True)
    probs = e * pl.reciprocal(denom, approx=True)               # (S_pad, S_pad)

    if vis:
        probs_ref[0, 0] = probs.astype(probs_ref.dtype)         # bf16 writeback

    # context^T = V^T . P^T  (contract key dims; attn_dropout is identity)
    probs_lp = probs.astype(qkv_scr.dtype)
    ctx_t = lax.dot_general(v_t, probs_lp, (((1,), (1,)), ((), ())),
                            preferred_element_type=jnp.float32)  # (d, S_pad)
    ctx_scr[h] = ctx_t.astype(ctx_scr.dtype)

    # ---- last head: fused output projection (single K = H matmul) -----------
    @pl.when(h == num_heads - 1)
    def _():
        ctx_t_full = ctx_scr[...].reshape(hidden, seq_pad).astype(compute_dtype)
        ctx = jnp.transpose(ctx_t_full)                         # (S_pad, H)
        out = jnp.dot(ctx, wo_ref[...], preferred_element_type=jnp.float32)
        out = out + bo_ref[...]                                 # proj_dropout = id
        out_ref[0] = out.astype(out_ref.dtype)


def attention_forward(hidden_states, params, *, num_heads, vis=True,
                      compute_dtype=jnp.bfloat16, out_dtype=jnp.float32,
                      probs_dtype=jnp.bfloat16, softmax_exp_dtype=jnp.float32,
                      seq_align=128):
    """Pallas-backed forward of the ViT Attention module.

    hidden_states: (B, S, H) float32.
    params: wq/wk/wv/wo (H, H) in PyTorch (out_features, in_features) layout,
            bq/bk/bv/bo (H,).
    Returns (attention_output (B,S,H) out_dtype,
             attention_probs (B,nH,S,S) probs_dtype when vis=True else None).

    softmax_exp_dtype: set to jnp.bfloat16 on v6e/v7x to use the bf16 EUP path
    (leave f32 on v5e).  out_dtype/probs_dtype can be bf16 to halve HBM
    writeback if downstream consumers accept it.
    """
    B, S, H = hidden_states.shape
    assert H % num_heads == 0
    d = H // num_heads
    scale = 1.0 / math.sqrt(d)

    # Pad the sequence so score/probs stores are lane-dense (unmasked vst).
    s_pad = ((S + seq_align - 1) // seq_align) * seq_align

    # Parameter pre-fusion (would normally happen once at load time):
    #  - concat Q/K/V into one (3H, H) (out,in) weight / (3H, 1) bias
    #  - fold the 1/sqrt(d) score scale into the Q weights & bias
    #  - transpose the output projection to (in, out) for a canonical matmul
    wqkv = jnp.concatenate([params["wq"] * scale, params["wk"], params["wv"]],
                           axis=0).astype(compute_dtype)              # (3H, H)
    bqkv = jnp.concatenate([params["bq"] * scale, params["bk"], params["bv"]]
                           ).reshape(3 * H, 1).astype(jnp.float32)    # (3H, 1)
    wo = jnp.transpose(params["wo"]).astype(compute_dtype)            # (H, H)
    bo = params["bo"].reshape(1, H).astype(jnp.float32)               # (1, H)

    x_lp = hidden_states.astype(compute_dtype)
    if s_pad != S:
        x_lp = jnp.pad(x_lp, ((0, 0), (0, s_pad - S), (0, 0)))

    # Scratch dtype: keep bf16 when head slabs stay sublane-tile aligned,
    # otherwise fall back to f32 (only matters for tiny head sizes).
    packing = 2 if jnp.dtype(compute_dtype).itemsize == 2 else 1
    scr_dtype = compute_dtype if d % (8 * packing) == 0 else jnp.float32

    kernel = partial(_attention_kernel, num_heads=num_heads, head_size=d,
                     hidden=H, seq=S, seq_pad=s_pad, vis=vis,
                     compute_dtype=compute_dtype, exp_dtype=softmax_exp_dtype)

    out_shapes = [jax.ShapeDtypeStruct((B, s_pad, H), out_dtype)]
    out_specs = [pl.BlockSpec((1, s_pad, H), lambda b, h: (b, 0, 0))]
    if vis:
        out_shapes.append(
            jax.ShapeDtypeStruct((B, num_heads, s_pad, s_pad), probs_dtype))
        out_specs.append(
            pl.BlockSpec((1, 1, s_pad, s_pad), lambda b, h: (b, h, 0, 0)))

    # Advisory cost estimate so XLA schedules around the custom call sensibly.
    flops = (2 * B * s_pad * H * 3 * H                       # QKV projection
             + 4 * B * num_heads * s_pad * s_pad * d         # scores + P@V
             + 2 * B * s_pad * H * H)                        # output projection
    transcendentals = B * num_heads * s_pad * s_pad
    bytes_accessed = (x_lp.size * x_lp.dtype.itemsize
                      + wqkv.size * wqkv.dtype.itemsize
                      + wo.size * wo.dtype.itemsize
                      + B * s_pad * H * jnp.dtype(out_dtype).itemsize
                      + (B * num_heads * s_pad * s_pad
                         * jnp.dtype(probs_dtype).itemsize if vis else 0))
    cost = pl.CostEstimate(flops=int(flops),
                           transcendentals=int(transcendentals),
                           bytes_accessed=int(bytes_accessed))

    # Generation-aware VMEM budget (v5e/v6e: 128 MiB phys, v7x: 64 MiB).
    try:
        vmem_cap = int(pltpu.get_tpu_info().vmem_capacity_bytes)
    except Exception:
        vmem_cap = 64 * 1024 * 1024
    vmem_limit = min(vmem_cap * 3 // 4, 96 * 1024 * 1024)

    def build(weights_resident):
        if weights_resident:
            # Grid-invariant weights: whole-array resident in VMEM, single
            # buffer (no per-step double-buffered DMA).
            def wspec(shape):
                del shape
                return pl.BlockSpec(memory_space=pltpu.MemorySpace.VMEM)
        else:
            def wspec(shape):
                n = len(shape)
                return pl.BlockSpec(shape, lambda b, h, _n=n: (0,) * _n)

        in_specs = [
            pl.BlockSpec((1, s_pad, H), lambda b, h: (b, 0, 0)),   # x
            wspec((3 * H, H)),                                     # wqkv
            wspec((3 * H, 1)),                                     # bqkv
            wspec((H, H)),                                         # wo
            wspec((1, H)),                                         # bo
        ]
        return pl.pallas_call(
            kernel,
            out_shape=tuple(out_shapes),
            grid_spec=pltpu.PrefetchScalarGridSpec(
                num_scalar_prefetch=0,
                grid=(B, num_heads),
                in_specs=in_specs,
                out_specs=tuple(out_specs),
                scratch_shapes=[
                    pltpu.VMEM((3 * num_heads, d, s_pad), scr_dtype),  # Q/K/V^T
                    pltpu.VMEM((num_heads, d, s_pad), scr_dtype),      # ctx^T
                ]),
            compiler_params=pltpu.CompilerParams(
                dimension_semantics=("parallel", "arbitrary"),
                vmem_limit_bytes=vmem_limit),
            cost_estimate=cost,
        )

    # TODO(synk): for B=1 inference on v7x, add a "parallel" query-tile grid
    # axis so the second TensorCore is used; batch-only parallelism is enough
    # for B>=2 and for v5e/v6e.
    args = (x_lp, wqkv, bqkv, wo, bo)
    try:
        results = build(True)(*args)
    except Exception:
        # Fallback: standard double-buffered blocked specs for the weights
        # (identical semantics, slightly larger VMEM footprint).
        results = build(False)(*args)

    if vis:
        out_p, probs_p = results
    else:
        out_p = results[0] if isinstance(results, (tuple, list)) else results
        probs_p = None

    out = out_p[:, :S, :] if s_pad != S else out_p
    probs = None
    if vis:
        probs = probs_p[:, :, :S, :S] if s_pad != S else probs_p
    return out, probs


def _reference(hidden_states, params, *, num_heads):
    """Pure-JAX f32 reference mirroring the PyTorch forward (eval mode)."""
    B, S, H = hidden_states.shape
    d = H // num_heads

    def linear(x, w, b):               # PyTorch Linear: y = x @ W.T + b
        return x @ w.T + b

    q = linear(hidden_states, params["wq"], params["bq"])
    k = linear(hidden_states, params["wk"], params["bk"])
    v = linear(hidden_states, params["wv"], params["bv"])

    def split_heads(t):
        return t.reshape(B, S, num_heads, d).transpose(0, 2, 1, 3)

    qh, kh, vh = split_heads(q), split_heads(k), split_heads(v)
    scores = jnp.einsum("bhqd,bhkd->bhqk", qh, kh) / math.sqrt(d)
    probs = jax.nn.softmax(scores, axis=-1)
    ctx = jnp.einsum("bhqk,bhkd->bhqd", probs, vh)
    ctx = ctx.transpose(0, 2, 1, 3).reshape(B, S, H)
    out = linear(ctx, params["wo"], params["bo"])
    return out, probs


if __name__ == "__main__":
    # Small config consistent with the module: hidden_size=32, num_heads=4.
    B, S, H, NUM_HEADS = 2, 8, 32, 4

    key = jax.random.PRNGKey(0)
    keys = jax.random.split(key, 9)
    x = jax.random.normal(keys[0], (B, S, H), dtype=jnp.float32)

    # PyTorch Linear stores weight as (out_features, in_features).
    def make_linear(kw, kb):
        w = jax.random.normal(kw, (H, H), dtype=jnp.float32) * 0.05
        b = jax.random.normal(kb, (H,), dtype=jnp.float32) * 0.05
        return w, b

    wq, bq = make_linear(keys[1], keys[2])
    wk, bk = make_linear(keys[3], keys[4])
    wv, bv = make_linear(keys[5], keys[6])
    wo, bo = make_linear(keys[7], keys[8])
    params = dict(wq=wq, bq=bq, wk=wk, bk=bk, wv=wv, bv=bv, wo=wo, bo=bo)

    # TODO(synk): attn_dropout / proj_dropout are identity here (eval mode);
    # stochastic dropout would need pltpu.prng_* inside the kernel.

    out, probs = attention_forward(x, params, num_heads=NUM_HEADS, vis=True)
    out = jax.block_until_ready(out)
    probs = jax.block_until_ready(probs)

    ref_out, ref_probs = _reference(x, params, num_heads=NUM_HEADS)

    assert out.shape == (B, S, H)
    assert probs.shape == (B, NUM_HEADS, S, S)
    # bf16 matmul operands / bf16 probs + approx softmax reciprocal => loosened.
    assert jnp.allclose(out, ref_out, atol=2e-2, rtol=2e-2), "output mismatch"
    assert jnp.allclose(probs.astype(jnp.float32), ref_probs,
                        atol=2e-2, rtol=2e-2), "probs mismatch"

    # vis=False path: probs are neither computed nor written (weights is None),
    # matching the module's `weights = None` branch.
    out_novis, weights = attention_forward(x, params, num_heads=NUM_HEADS,
                                           vis=False)
    out_novis = jax.block_until_ready(out_novis)
    assert weights is None
    assert jnp.allclose(out_novis, ref_out, atol=2e-2, rtol=2e-2), \
        "vis=False output mismatch"

    print("KERNEL_OK")
</pallas_src>

<mosaic_0001>
module attributes {stable_mosaic.version = 11 : i64} {
  func.func @_attention_kernel(%arg0: i32, %arg1: i32, %arg2: memref<1x128x32xbf16, #tpu.memory_space<vmem>>, %arg3: memref<96x32xbf16, #tpu.memory_space<vmem>>, %arg4: memref<96x1xf32, #tpu.memory_space<vmem>>, %arg5: memref<32x32xbf16, #tpu.memory_space<vmem>>, %arg6: memref<1x32xf32, #tpu.memory_space<vmem>>, %arg7: memref<1x128x32xf32, #tpu.memory_space<vmem>>, %arg8: memref<1x1x128x128xbf16, #tpu.memory_space<vmem>>, %arg9: memref<12x8x128xf32, #tpu.memory_space<vmem>>, %arg10: memref<4x8x128xf32, #tpu.memory_space<vmem>>) attributes {dimension_semantics = [#tpu.dimension_semantics<parallel>, #tpu.dimension_semantics<arbitrary>], iteration_bounds = array<i64: 2, 4>, scalar_prefetch = 0 : i64, scratch_operands = 2 : i64, tpu.core_type = #tpu.core_type<tc>, window_params = [{transform_indices = @transform_0, window_bounds = array<i64: 1, 128, 32>}, {pipeline_mode = #tpu.pipeline_mode<synchronous>, transform_indices = @transform_1, window_bounds = array<i64: 96, 32>}, {pipeline_mode = #tpu.pipeline_mode<synchronous>, transform_indices = @transform_2, window_bounds = array<i64: 96, 1>}, {pipeline_mode = #tpu.pipeline_mode<synchronous>, transform_indices = @transform_3, window_bounds = array<i64: 32, 32>}, {pipeline_mode = #tpu.pipeline_mode<synchronous>, transform_indices = @transform_4, window_bounds = array<i64: 1, 32>}, {transform_indices = @transform_5, window_bounds = array<i64: 1, 128, 32>}, {transform_indices = @transform_6, window_bounds = array<i64: 1, 1, 128, 128>}]} {
    %c0_i32 = arith.constant 0 : i32
    %0 = arith.cmpi eq, %arg1, %c0_i32 : i32
    %1 = arith.extui %0 : i1 to i32
    %c0_i32_0 = arith.constant 0 : i32
    %2 = arith.cmpi ne, %1, %c0_i32_0 : i32
    scf.if %2 {
      %c0_18 = arith.constant 0 : index
      %c0_19 = arith.constant 0 : index
      %c0_20 = arith.constant 0 : index
      %45 = vector.load %arg2[%c0_18, %c0_19, %c0_20] : memref<1x128x32xbf16, #tpu.memory_space<vmem>>, vector<1x128x32xbf16>
      %46 = vector.shape_cast %45 : vector<1x128x32xbf16> to vector<128x32xbf16>
      %c0_21 = arith.constant 0 : index
      %c0_22 = arith.constant 0 : index
      %47 = vector.load %arg3[%c0_21, %c0_22] : memref<96x32xbf16, #tpu.memory_space<vmem>>, vector<96x32xbf16>
      %cst_23 = arith.constant dense<0.000000e+00> : vector<96x128xf32>
      %48 = tpu.matmul %47, %46, %cst_23 {dimension_numbers = #tpu.dot_dimension_numbers<[1], [1], [0], [0], [0, 0, 1, 0], [], []>} : vector<96x32xbf16>, vector<128x32xbf16>, vector<96x128xf32> -> vector<96x128xf32>
      %c0_24 = arith.constant 0 : index
      %c0_25 = arith.constant 0 : index
      %49 = vector.load %arg4[%c0_24, %c0_25] : memref<96x1xf32, #tpu.memory_space<vmem>>, vector<96x1xf32>
      %50 = vector.broadcast %49 : vector<96x1xf32> to vector<96x128xf32>
      %51 = arith.addf %48, %50 : vector<96x128xf32>
      %52 = vector.shape_cast %51 : vector<96x128xf32> to vector<12x8x128xf32>
      %c0_26 = arith.constant 0 : index
      %c0_27 = arith.constant 0 : index
      %c0_28 = arith.constant 0 : index
      %53 = vector.load %arg9[%c0_26, %c0_27, %c0_28] : memref<12x8x128xf32, #tpu.memory_space<vmem>>, vector<12x8x128xf32>
      tpu.vector_store %arg9[%c0_26, %c0_27, %c0_28], %52 {strides = array<i32>} : memref<12x8x128xf32, #tpu.memory_space<vmem>>, vector<12x8x128xf32>,
    } else {
    }
    %3 = arith.index_cast %arg1 : i32 to index
    %c0 = arith.constant 0 : index
    %c0_1 = arith.constant 0 : index
    %4 = vector.load %arg9[%3, %c0, %c0_1] : memref<12x8x128xf32, #tpu.memory_space<vmem>>, vector<1x8x128xf32>
    %5 = vector.shape_cast %4 : vector<1x8x128xf32> to vector<8x128xf32>
    %c4_i32 = arith.constant 4 : i32
    %6 = arith.addi %c4_i32, %arg1 : i32
    %7 = arith.index_cast %6 : i32 to index
    %c0_2 = arith.constant 0 : index
    %c0_3 = arith.constant 0 : index
    %8 = vector.load %arg9[%7, %c0_2, %c0_3] : memref<12x8x128xf32, #tpu.memory_space<vmem>>, vector<1x8x128xf32>
    %9 = vector.shape_cast %8 : vector<1x8x128xf32> to vector<8x128xf32>
    %c8_i32 = arith.constant 8 : i32
    %10 = arith.addi %c8_i32, %arg1 : i32
    %11 = arith.index_cast %10 : i32 to index
    %c0_4 = arith.constant 0 : index
    %c0_5 = arith.constant 0 : index
    %12 = vector.load %arg9[%11, %c0_4, %c0_5] : memref<12x8x128xf32, #tpu.memory_space<vmem>>, vector<1x8x128xf32>
    %13 = vector.shape_cast %12 : vector<1x8x128xf32> to vector<8x128xf32>
    %14 = tpu.transpose %5, [1, 0] : vector<8x128xf32> -> vector<128x8xf32>
    %cst = arith.constant dense<0.000000e+00> : vector<128x128xf32>
    %15 = tpu.matmul %14, %9, %cst {dimension_numbers = #tpu.dot_dimension_numbers<[1], [0], [0], [1], [0, 0, 1, 1], [], []>} : vector<128x8xf32>, vector<8x128xf32>, vector<128x128xf32> -> vector<128x128xf32>
    %16 = tpu.iota {dimensions = array<i32: 1>} : vector<1x128xi32>
    %c8_i32_6 = arith.constant 8 : i32
    %17 = vector.broadcast %c8_i32_6 : i32 to vector<1x128xi32>
    %18 = arith.cmpi slt, %16, %17 : vector<1x128xi32>
    %cst_7 = arith.constant -1.000000e+30 : f32
    %19 = vector.shape_cast %18 : vector<1x128xi1> to vector<1x128xi1>
    %20 = vector.broadcast %19 : vector<1x128xi1> to vector<128x128xi1>
    %21 = vector.broadcast %cst_7 : f32 to vector<128x128xf32>
    %22 = arith.select %20, %15, %21 : vector<128x128xi1>, vector<128x128xf32>
    %cst_8 = arith.constant dense<0xFF800000> : vector<128xf32>
    %23 = vector.multi_reduction <maximumf>, %22, %cst_8 [1] : vector<128x128xf32> to vector<128xf32>
    %24 = vector.shape_cast %23 : vector<128xf32> to vector<128x1xf32>
    %25 = vector.broadcast %24 : vector<128x1xf32> to vector<128x128xf32>
    %26 = arith.subf %22, %25 : vector<128x128xf32>
    %27 = math.exp %26 : vector<128x128xf32>
    %cst_9 = arith.constant dense<0.000000e+00> : vector<128xf32>
    %28 = vector.multi_reduction <add>, %27, %cst_9 [1] : vector<128x128xf32> to vector<128xf32>
    %29 = vector.shape_cast %28 : vector<128xf32> to vector<128x1xf32>
    %30 = tpu.reciprocal %29 {approx = true} : vector<128x1xf32> -> vector<128x1xf32>
    %31 = vector.broadcast %30 : vector<128x1xf32> to vector<128x128xf32>
    %32 = arith.mulf %27, %31 : vector<128x128xf32>
    %33 = arith.truncf %32 : vector<128x128xf32> to vector<128x128xbf16>
    %c0_10 = arith.constant 0 : index
    %c0_11 = arith.constant 0 : index
    %c0_12 = arith.constant 0 : index
    %c0_13 = arith.constant 0 : index
    %34 = vector.load %arg8[%c0_10, %c0_11, %c0_12, %c0_13] : memref<1x1x128x128xbf16, #tpu.memory_space<vmem>>, vector<1x1x128x128xbf16>
    %35 = vector.shape_cast %34 : vector<1x1x128x128xbf16> to vector<128x128xbf16>
    %36 = vector.shape_cast %33 : vector<128x128xbf16> to vector<1x1x128x128xbf16>
    tpu.vector_store %arg8[%c0_10, %c0_11, %c0_12, %c0_13], %36 {strides = array<i32>} : memref<1x1x128x128xbf16, #tpu.memory_space<vmem>>, vector<1x1x128x128xbf16>,
    %cst_14 = arith.constant dense<0.000000e+00> : vector<8x128xf32>
    %37 = tpu.matmul %13, %32, %cst_14 {dimension_numbers = #tpu.dot_dimension_numbers<[1], [1], [0], [0], [0, 0, 1, 0], [], []>} : vector<8x128xf32>, vector<128x128xf32>, vector<8x128xf32> -> vector<8x128xf32>
    %38 = arith.index_cast %arg1 : i32 to index
    %c0_15 = arith.constant 0 : index
    %c0_16 = arith.constant 0 : index
    %39 = vector.load %arg10[%38, %c0_15, %c0_16] : memref<4x8x128xf32, #tpu.memory_space<vmem>>, vector<1x8x128xf32>
    %40 = vector.shape_cast %39 : vector<1x8x128xf32> to vector<8x128xf32>
    %41 = vector.shape_cast %37 : vector<8x128xf32> to vector<1x8x128xf32>
    tpu.vector_store %arg10[%38, %c0_15, %c0_16], %41 {strides = array<i32>} : memref<4x8x128xf32, #tpu.memory_space<vmem>>, vector<1x8x128xf32>,
    %c3_i32 = arith.constant 3 : i32
    %42 = arith.cmpi eq, %arg1, %c3_i32 : i32
    %43 = arith.extui %42 : i1 to i32
    %c0_i32_17 = arith.constant 0 : i32
    %44 = arith.cmpi ne, %43, %c0_i32_17 : i32
    scf.if %44 {
      %c0_18 = arith.constant 0 : index
      %c0_19 = arith.constant 0 : index
      %c0_20 = arith.constant 0 : index
      %45 = vector.load %arg10[%c0_18, %c0_19, %c0_20] : memref<4x8x128xf32, #tpu.memory_space<vmem>>, vector<4x8x128xf32>
      %46 = vector.shape_cast %45 : vector<4x8x128xf32> to vector<32x128xf32>
      %47 = arith.truncf %46 : vector<32x128xf32> to vector<32x128xbf16>
      %48 = tpu.transpose %47, [1, 0] : vector<32x128xbf16> -> vector<128x32xbf16>
      %c0_21 = arith.constant 0 : index
      %c0_22 = arith.constant 0 : index
      %49 = vector.load %arg5[%c0_21, %c0_22] : memref<32x32xbf16, #tpu.memory_space<vmem>>, vector<32x32xbf16>
      %cst_23 = arith.constant dense<0.000000e+00> : vector<128x32xf32>
      %50 = tpu.matmul %48, %49, %cst_23 {dimension_numbers = #tpu.dot_dimension_numbers<[1], [0], [0], [1], [0, 0, 1, 1], [], []>} : vector<128x32xbf16>, vector<32x32xbf16>, vector<128x32xf32> -> vector<128x32xf32>
      %c0_24 = arith.constant 0 : index
      %c0_25 = arith.constant 0 : index
      %51 = vector.load %arg6[%c0_24, %c0_25] : memref<1x32xf32, #tpu.memory_space<vmem>>, vector<1x32xf32>
      %52 = vector.broadcast %51 : vector<1x32xf32> to vector<128x32xf32>
      %53 = arith.addf %50, %52 : vector<128x32xf32>
      %c0_26 = arith.constant 0 : index
      %c0_27 = arith.constant 0 : index
      %c0_28 = arith.constant 0 : index
      %54 = vector.load %arg7[%c0_26, %c0_27, %c0_28] : memref<1x128x32xf32, #tpu.memory_space<vmem>>, vector<1x128x32xf32>
      %55 = vector.shape_cast %54 : vector<1x128x32xf32> to vector<128x32xf32>
      %56 = vector.shape_cast %53 : vector<128x32xf32> to vector<1x128x32xf32>
      tpu.vector_store %arg7[%c0_26, %c0_27, %c0_28], %56 {strides = array<i32>} : memref<1x128x32xf32, #tpu.memory_space<vmem>>, vector<1x128x32xf32>,
    } else {
    }
    return
  }
  func.func @transform_0(%arg0: i32, %arg1: i32) -> (i32, i32, i32) {
    %c0_i32 = arith.constant 0 : i32
    %c0_i32_0 = arith.constant 0 : i32
    %c0_i32_1 = arith.constant 0 : i32
    return %arg0, %c0_i32, %c0_i32_0 : i32, i32, i32
  }
  func.func @transform_1(%arg0: i32, %arg1: i32) -> (i32, i32) {
    %c0_i32 = arith.constant 0 : i32
    %c0_i32_0 = arith.constant 0 : i32
    %c0_i32_1 = arith.constant 0 : i32
    return %c0_i32, %c0_i32_0 : i32, i32
  }
  func.func @transform_2(%arg0: i32, %arg1: i32) -> (i32, i32) {
    %c0_i32 = arith.constant 0 : i32
    %c0_i32_0 = arith.constant 0 : i32
    %c0_i32_1 = arith.constant 0 : i32
    return %c0_i32, %c0_i32_0 : i32, i32
  }
  func.func @transform_3(%arg0: i32, %arg1: i32) -> (i32, i32) {
    %c0_i32 = arith.constant 0 : i32
    %c0_i32_0 = arith.constant 0 : i32
    %c0_i32_1 = arith.constant 0 : i32
    return %c0_i32, %c0_i32_0 : i32, i32
  }
  func.func @transform_4(%arg0: i32, %arg1: i32) -> (i32, i32) {
    %c0_i32 = arith.constant 0 : i32
    %c0_i32_0 = arith.constant 0 : i32
    %c0_i32_1 = arith.constant 0 : i32
    return %c0_i32, %c0_i32_0 : i32, i32
  }
  func.func @transform_5(%arg0: i32, %arg1: i32) -> (i32, i32, i32) {
    %c0_i32 = arith.constant 0 : i32
    %c0_i32_0 = arith.constant 0 : i32
    %c0_i32_1 = arith.constant 0 : i32
    return %arg0, %c0_i32, %c0_i32_0 : i32, i32, i32
  }
  func.func @transform_6(%arg0: i32, %arg1: i32) -> (i32, i32, i32, i32) {
    %c0_i32 = arith.constant 0 : i32
    %c0_i32_0 = arith.constant 0 : i32
    %c0_i32_1 = arith.constant 0 : i32
    return %arg0, %arg1, %c0_i32, %c0_i32_0 : i32, i32, i32, i32
  }
}

module attributes {stable_mosaic.version = 11 : i64} {
  func.func @_attention_kernel(%arg0: i32, %arg1: i32, %arg2: memref<1x128x32xbf16, #tpu.memory_space<vmem>>, %arg3: memref<96x32xbf16, #tpu.memory_space<vmem>>, %arg4: memref<96x1xf32, #tpu.memory_space<vmem>>, %arg5: memref<32x32xbf16, #tpu.memory_space<vmem>>, %arg6: memref<1x32xf32, #tpu.memory_space<vmem>>, %arg7: memref<1x128x32xf32, #tpu.memory_space<vmem>>, %arg8: memref<1x1x128x128xbf16, #tpu.memory_space<vmem>>, %arg9: memref<12x8x128xf32, #tpu.memory_space<vmem>>, %arg10: memref<4x8x128xf32, #tpu.memory_space<vmem>>) attributes {dimension_semantics = [#tpu.dimension_semantics<parallel>, #tpu.dimension_semantics<arbitrary>], iteration_bounds = array<i64: 2, 4>, scalar_prefetch = 0 : i64, scratch_operands = 2 : i64, tpu.core_type = #tpu.core_type<tc>, window_params = [{transform_indices = @transform_0, window_bounds = array<i64: 1, 128, 32>}, {pipeline_mode = #tpu.pipeline_mode<synchronous>, transform_indices = @transform_1, window_bounds = array<i64: 96, 32>}, {pipeline_mode = #tpu.pipeline_mode<synchronous>, transform_indices = @transform_2, window_bounds = array<i64: 96, 1>}, {pipeline_mode = #tpu.pipeline_mode<synchronous>, transform_indices = @transform_3, window_bounds = array<i64: 32, 32>}, {pipeline_mode = #tpu.pipeline_mode<synchronous>, transform_indices = @transform_4, window_bounds = array<i64: 1, 32>}, {transform_indices = @transform_5, window_bounds = array<i64: 1, 128, 32>}, {transform_indices = @transform_6, window_bounds = array<i64: 1, 1, 128, 128>}]} {
    %c0_i32 = arith.constant 0 : i32
    %0 = arith.cmpi eq, %arg1, %c0_i32 : i32
    %1 = arith.extui %0 : i1 to i32
    %c0_i32_0 = arith.constant 0 : i32
    %2 = arith.cmpi ne, %1, %c0_i32_0 : i32
    scf.if %2 {
      %c0_18 = arith.constant 0 : index
      %c0_19 = arith.constant 0 : index
      %c0_20 = arith.constant 0 : index
      %45 = vector.load %arg2[%c0_18, %c0_19, %c0_20] : memref<1x128x32xbf16, #tpu.memory_space<vmem>>, vector<1x128x32xbf16>
      %46 = vector.shape_cast %45 : vector<1x128x32xbf16> to vector<128x32xbf16>
      %c0_21 = arith.constant 0 : index
      %c0_22 = arith.constant 0 : index
      %47 = vector.load %arg3[%c0_21, %c0_22] : memref<96x32xbf16, #tpu.memory_space<vmem>>, vector<96x32xbf16>
      %cst_23 = arith.constant dense<0.000000e+00> : vector<96x128xf32>
      %48 = tpu.matmul %47, %46, %cst_23 {dimension_numbers = #tpu.dot_dimension_numbers<[1], [1], [0], [0], [0, 0, 1, 0], [], []>} : vector<96x32xbf16>, vector<128x32xbf16>, vector<96x128xf32> -> vector<96x128xf32>
      %c0_24 = arith.constant 0 : index
      %c0_25 = arith.constant 0 : index
      %49 = vector.load %arg4[%c0_24, %c0_25] : memref<96x1xf32, #tpu.memory_space<vmem>>, vector<96x1xf32>
      %50 = vector.broadcast %49 : vector<96x1xf32> to vector<96x128xf32>
      %51 = arith.addf %48, %50 : vector<96x128xf32>
      %52 = vector.shape_cast %51 : vector<96x128xf32> to vector<12x8x128xf32>
      %c0_26 = arith.constant 0 : index
      %c0_27 = arith.constant 0 : index
      %c0_28 = arith.constant 0 : index
      %53 = vector.load %arg9[%c0_26, %c0_27, %c0_28] : memref<12x8x128xf32, #tpu.memory_space<vmem>>, vector<12x8x128xf32>
      tpu.vector_store %arg9[%c0_26, %c0_27, %c0_28], %52 {strides = array<i32>} : memref<12x8x128xf32, #tpu.memory_space<vmem>>, vector<12x8x128xf32>,
    } else {
    }
    %3 = arith.index_cast %arg1 : i32 to index
    %c0 = arith.constant 0 : index
    %c0_1 = arith.constant 0 : index
    %4 = vector.load %arg9[%3, %c0, %c0_1] : memref<12x8x128xf32, #tpu.memory_space<vmem>>, vector<1x8x128xf32>
    %5 = vector.shape_cast %4 : vector<1x8x128xf32> to vector<8x128xf32>
    %c4_i32 = arith.constant 4 : i32
    %6 = arith.addi %c4_i32, %arg1 : i32
    %7 = arith.index_cast %6 : i32 to index
    %c0_2 = arith.constant 0 : index
    %c0_3 = arith.constant 0 : index
    %8 = vector.load %arg9[%7, %c0_2, %c0_3] : memref<12x8x128xf32, #tpu.memory_space<vmem>>, vector<1x8x128xf32>
    %9 = vector.shape_cast %8 : vector<1x8x128xf32> to vector<8x128xf32>
    %c8_i32 = arith.constant 8 : i32
    %10 = arith.addi %c8_i32, %arg1 : i32
    %11 = arith.index_cast %10 : i32 to index
    %c0_4 = arith.constant 0 : index
    %c0_5 = arith.constant 0 : index
    %12 = vector.load %arg9[%11, %c0_4, %c0_5] : memref<12x8x128xf32, #tpu.memory_space<vmem>>, vector<1x8x128xf32>
    %13 = vector.shape_cast %12 : vector<1x8x128xf32> to vector<8x128xf32>
    %14 = tpu.transpose %5, [1, 0] : vector<8x128xf32> -> vector<128x8xf32>
    %cst = arith.constant dense<0.000000e+00> : vector<128x128xf32>
    %15 = tpu.matmul %14, %9, %cst {dimension_numbers = #tpu.dot_dimension_numbers<[1], [0], [0], [1], [0, 0, 1, 1], [], []>} : vector<128x8xf32>, vector<8x128xf32>, vector<128x128xf32> -> vector<128x128xf32>
    %16 = tpu.iota {dimensions = array<i32: 1>} : vector<1x128xi32>
    %c8_i32_6 = arith.constant 8 : i32
    %17 = vector.broadcast %c8_i32_6 : i32 to vector<1x128xi32>
    %18 = arith.cmpi slt, %16, %17 : vector<1x128xi32>
    %cst_7 = arith.constant -1.000000e+30 : f32
    %19 = vector.shape_cast %18 : vector<1x128xi1> to vector<1x128xi1>
    %20 = vector.broadcast %19 : vector<1x128xi1> to vector<128x128xi1>
    %21 = vector.broadcast %cst_7 : f32 to vector<128x128xf32>
    %22 = arith.select %20, %15, %21 : vector<128x128xi1>, vector<128x128xf32>
    %cst_8 = arith.constant dense<0xFF800000> : vector<128xf32>
    %23 = vector.multi_reduction <maximumf>, %22, %cst_8 [1] : vector<128x128xf32> to vector<128xf32>
    %24 = vector.shape_cast %23 : vector<128xf32> to vector<128x1xf32>
    %25 = vector.broadcast %24 : vector<128x1xf32> to vector<128x128xf32>
    %26 = arith.subf %22, %25 : vector<128x128xf32>
    %27 = math.exp %26 : vector<128x128xf32>
    %cst_9 = arith.constant dense<0.000000e+00> : vector<128xf32>
    %28 = vector.multi_reduction <add>, %27, %cst_9 [1] : vector<128x128xf32> to vector<128xf32>
    %29 = vector.shape_cast %28 : vector<128xf32> to vector<128x1xf32>
    %30 = tpu.reciprocal %29 {approx = true} : vector<128x1xf32> -> vector<128x1xf32>
    %31 = vector.broadcast %30 : vector<128x1xf32> to vector<128x128xf32>
    %32 = arith.mulf %27, %31 : vector<128x128xf32>
    %33 = arith.truncf %32 : vector<128x128xf32> to vector<128x128xbf16>
    %c0_10 = arith.constant 0 : index
    %c0_11 = arith.constant 0 : index
    %c0_12 = arith.constant 0 : index
    %c0_13 = arith.constant 0 : index
    %34 = vector.load %arg8[%c0_10, %c0_11, %c0_12, %c0_13] : memref<1x1x128x128xbf16, #tpu.memory_space<vmem>>, vector<1x1x128x128xbf16>
    %35 = vector.shape_cast %34 : vector<1x1x128x128xbf16> to vector<128x128xbf16>
    %36 = vector.shape_cast %33 : vector<128x128xbf16> to vector<1x1x128x128xbf16>
    tpu.vector_store %arg8[%c0_10, %c0_11, %c0_12, %c0_13], %36 {strides = array<i32>} : memref<1x1x128x128xbf16, #tpu.memory_space<vmem>>, vector<1x1x128x128xbf16>,
    %cst_14 = arith.constant dense<0.000000e+00> : vector<8x128xf32>
    %37 = tpu.matmul %13, %32, %cst_14 {dimension_numbers = #tpu.dot_dimension_numbers<[1], [1], [0], [0], [0, 0, 1, 0], [], []>} : vector<8x128xf32>, vector<128x128xf32>, vector<8x128xf32> -> vector<8x128xf32>
    %38 = arith.index_cast %arg1 : i32 to index
    %c0_15 = arith.constant 0 : index
    %c0_16 = arith.constant 0 : index
    %39 = vector.load %arg10[%38, %c0_15, %c0_16] : memref<4x8x128xf32, #tpu.memory_space<vmem>>, vector<1x8x128xf32>
    %40 = vector.shape_cast %39 : vector<1x8x128xf32> to vector<8x128xf32>
    %41 = vector.shape_cast %37 : vector<8x128xf32> to vector<1x8x128xf32>
    tpu.vector_store %arg10[%38, %c0_15, %c0_16], %41 {strides = array<i32>} : memref<4x8x128xf32, #tpu.memory_space<vmem>>, vector<1x8x128xf32>,
    %c3_i32 = arith.constant 3 : i32
    %42 = arith.cmpi eq, %arg1, %c3_i32 : i32
    %43 = arith.extui %42 : i1 to i32
    %c0_i32_17 = arith.constant 0 : i32
    %44 = arith.cmpi ne, %43, %c0_i32_17 : i32
    scf.if %44 {
      %c0_18 = arith.constant 0 : index
      %c0_19 = arith.constant 0 : index
      %c0_20 = arith.constant 0 : index
      %45 = vector.load %arg10[%c0_18, %c0_19, %c0_20] : memref<4x8x128xf32, #tpu.memory_space<vmem>>, vector<4x8x128xf32>
      %46 = vector.shape_cast %45 : vector<4x8x128xf32> to vector<32x128xf32>
      %47 = arith.truncf %46 : vector<32x128xf32> to vector<32x128xbf16>
      %48 = tpu.transpose %47, [1, 0] : vector<32x128xbf16> -> vector<128x32xbf16>
      %c0_21 = arith.constant 0 : index
      %c0_22 = arith.constant 0 : index
      %49 = vector.load %arg5[%c0_21, %c0_22] : memref<32x32xbf16, #tpu.memory_space<vmem>>, vector<32x32xbf16>
      %cst_23 = arith.constant dense<0.000000e+00> : vector<128x32xf32>
      %50 = tpu.matmul %48, %49, %cst_23 {dimension_numbers = #tpu.dot_dimension_numbers<[1], [0], [0], [1], [0, 0, 1, 1], [], []>} : vector<128x32xbf16>, vector<32x32xbf16>, vector<128x32xf32> -> vector<128x32xf32>
      %c0_24 = arith.constant 0 : index
      %c0_25 = arith.constant 0 : index
      %51 = vector.load %arg6[%c0_24, %c0_25] : memref<1x32xf32, #tpu.memory_space<vmem>>, vector<1x32xf32>
      %52 = vector.broadcast %51 : vector<1x32xf32> to vector<128x32xf32>
      %53 = arith.addf %50, %52 : vector<128x32xf32>
      %c0_26 = arith.constant 0 : index
      %c0_27 = arith.constant 0 : index
      %c0_28 = arith.constant 0 : index
      %54 = vector.load %arg7[%c0_26, %c0_27, %c0_28] : memref<1x128x32xf32, #tpu.memory_space<vmem>>, vector<1x128x32xf32>
      %55 = vector.shape_cast %54 : vector<1x128x32xf32> to vector<128x32xf32>
      %56 = vector.shape_cast %53 : vector<128x32xf32> to vector<1x128x32xf32>
      tpu.vector_store %arg7[%c0_26, %c0_27, %c0_28], %56 {strides = array<i32>} : memref<1x128x32xf32, #tpu.memory_space<vmem>>, vector<1x128x32xf32>,
    } else {
    }
    return
  }
  func.func @transform_0(%arg0: i32, %arg1: i32) -> (i32, i32, i32) {
    %c0_i32 = arith.constant 0 : i32
    %c0_i32_0 = arith.constant 0 : i32
    %c0_i32_1 = arith.constant 0 : i32
    return %arg0, %c0_i32, %c0_i32_0 : i32, i32, i32
  }
  func.func @transform_1(%arg0: i32, %arg1: i32) -> (i32, i32) {
    %c0_i32 = arith.constant 0 : i32
    %c0_i32_0 = arith.constant 0 : i32
    %c0_i32_1 = arith.constant 0 : i32
    return %c0_i32, %c0_i32_0 : i32, i32
  }
  func.func @transform_2(%arg0: i32, %arg1: i32) -> (i32, i32) {
    %c0_i32 = arith.constant 0 : i32
    %c0_i32_0 = arith.constant 0 : i32
    %c0_i32_1 = arith.constant 0 : i32
    return %c0_i32, %c0_i32_0 : i32, i32
  }
  func.func @transform_3(%arg0: i32, %arg1: i32) -> (i32, i32) {
    %c0_i32 = arith.constant 0 : i32
    %c0_i32_0 = arith.constant 0 : i32
    %c0_i32_1 = arith.constant 0 : i32
    return %c0_i32, %c0_i32_0 : i32, i32
  }
  func.func @transform_4(%arg0: i32, %arg1: i32) -> (i32, i32) {
    %c0_i32 = arith.constant 0 : i32
    %c0_i32_0 = arith.constant 0 : i32
    %c0_i32_1 = arith.constant 0 : i32
    return %c0_i32, %c0_i32_0 : i32, i32
  }
  func.func @transform_5(%arg0: i32, %arg1: i32) -> (i32, i32, i32) {
    %c0_i32 = arith.constant 0 : i32
    %c0_i32_0 = arith.constant 0 : i32
    %c0_i32_1 = arith.constant 0 : i32
    return %arg0, %c0_i32, %c0_i32_0 : i32, i32, i32
  }
  func.func @transform_6(%arg0: i32, %arg1: i32) -> (i32, i32, i32, i32) {
    %c0_i32 = arith.constant 0 : i32
    %c0_i32_0 = arith.constant 0 : i32
    %c0_i32_1 = arith.constant 0 : i32
    return %arg0, %arg1, %c0_i32, %c0_i32_0 : i32, i32, i32, i32
  }
}

</mosaic_0001>

<bundles_post_ra>
// kernel: tpu_custom_call.1
= control target key start
LH: loop header
LB: loop body
LE: loop exit
PB: predicated region body
PF: predicated region fallthrough
CT: control target
= control target key end

     0   :  { %s2094_s0 = inlined_call_operand.vmem [shape: bf16[2,128,32], index: 0, kind: input, shape index: {}]   ;;  %s2095_s1 = inlined_call_operand.vmem [shape: bf16[96,32], index: 1, kind: input, shape index: {}]   ;;  %s2096_s2 = inlined_call_operand.vmem [shape: f32[96,1], index: 2, kind: input, shape index: {}]   ;;  %s2097_s3 = inlined_call_operand.vmem [shape: bf16[32,32], index: 3, kind: input, shape index: {}]   ;;  %s2098_s4 = inlined_call_operand.vmem [shape: f32[1,32], index: 4, kind: input, shape index: {}]   ;;  %s2099_s5 = inlined_call_operand.vmem [shape: f32[2,128,32], index: 5, kind: output, shape index: {0}]   ;;  %s2100_s6 = inlined_call_operand.hbm [shape: bf16[2,4,128,128], index: 6, kind: output, shape index: {1}]  }
   0x1   :  { %2103 = sst [smem:[#allocation8_spill]] %s2094_s0 }
   0x2   :  { %2104 = sst [smem:[#allocation9_spill]] %s2095_s1 }
   0x3   :  { %12 = vsyncpa [#allocation5], 0 }
   0x4   :  { %14 = vsyncpa [#allocation5 + $0x1], 0  ;;  %s1687_s21 = smov 0   ;;  %s1689_s22 = smov 0  }
   0x5   :  { %s1691_s23 = smov 0   ;;  %s1693_s24 = smov 0  }
   0x6   :  { %s1695_s25 = smov 0   ;;  %s1697_s26 = smov 0  }
   0x7   :  { %s1699_s27 = smov 0   ;;  %s1701_s28 = smov 0  }
   0x8 LB: > { %s1195_s29 = sadd.s32 4294967295, %s1647_s28   ;;  %s1196_s30 = sadd.s32 4294967294, %s1647_s28   ;;  %s1647_s28 = sphi %s1701_s28, %s20_s28   ;;  %s1643_s27 = sphi %s1699_s27, %s2118_s27   ;;  %s1639_s26 = sphi %s1697_s26, %s2117_s26   ;;  %s1635_s25 = sphi %s1695_s25, %s2116_s25   ;;  %s1631_s24 = sphi %s1693_s24, %s2115_s24   ;;  %s1627_s23 = sphi %s1691_s23, %s2114_s23   ;;  %s1623_s22 = sphi %s1689_s22, %s2113_s22   ;;  %s1619_s21 = sphi %s1687_s21, %s2112_s21  }
   0x9   : > { %s29_s7 = sadd.s32 1, %s1639_s26  ;;  %s32_s8 = sadd.s32 1, %s1643_s27 }
   0xa   : > { %p30_p0 = scmp.ge.s32.totalorder %s29_s7, 4  ;;  %p187_p1 = scmp.ne.s32.totalorder %s1627_s23, %s1623_s22 }
   0xb   : > { %p188_p2 = scmp.eq.s32.totalorder %s1195_s29, 7  ;;  %p193_p5 = scmp.ne.s32.totalorder %s1623_s22, %s1619_s21 }
   0xc   : > { %s2120_s7 = smov (%p30_p0, %s29_s7), 0  ;;  %s2122_s8 = smov (!%p30_p0, %s32_s8), %s1643_s27 }
   0xd   : > { %s173_s9 = ssub.s32 %s1639_s26, %s2120_s7  ;;  %p1738_p3 = por %p188_p2, %p187_p1 }
   0xe   : > { %p34_p4 = scmp.ge.s32.totalorder %s2122_s8, 2  ;;  %p194_p6 = scmp.eq.s32.totalorder %s1196_s30, 7 }
   0xf   : > { %p1199_p7 = scmp.ge.s32.totalorder %s1647_s28, 1  ;;  %p232_p9 = scmp.lt.s32.totalorder %s1647_s28, 9 }
  0x10   : > { %s2124_s8 = smov (%p34_p4, %s2122_s8), 0  ;;  %p1747_p8 = por %p194_p6, %p193_p5 }
  0x11   : > { %2106 = sst [smem:[#allocation7_spill]] %s2124_s8  ;;  %s172_s12 = ssub.s32 %s1643_s27, %s2124_s8 }
  0x12   : > { %s177_s13 = sadd.s32 1, %s1627_s23  ;;  %s174_s14 = sor.u32 %s173_s9, %s172_s12 }
  0x13   : > { %p233_p10 = pnand %p1199_p7, %p232_p9  ;;  %p175_p11 = scmp.eq.s32.totalorder %s174_s14, 0 }
  0x14   : > { %s2102_s16 = sand.u32 (!%p233_p10), 1, %s1623_s22   ;;  %p267_p12 = scmp.lt.s32.totalorder (!%p233_p10), %s1635_s25, 1 }
  0x15   : > { %s1756_s15 = scalar_select %p175_p11, %s1627_s23, %s177_s13  }
  0x16   : > { %236 = sbr.rel (%p233_p10) target bundleno = 1586 (0x632), region = 40  ;;  %s1200_s17 = sshll.u32 (!%p233_p10), %s2102_s16, 6 }
  0x17   : > { %s2108_s0 = sld [smem:[#allocation8_spill]] (!%p233_p10)  ;;  %s1773_s8 = scalar_lea.vmem (!%p233_p10), [#allocation4], %s1200_s17 }
  0x18   : > { %p1205_p13 = scmp.ne.s32.totalorder (!%p233_p10), %s1631_s24, 0 }
  0x1b   : > { %s268_s18 = scalar_select %p267_p12, %s1635_s25, 1 }
  0x1c   : > { %281 = sbr.rel (%p1205_p13) target bundleno = 259 (0x103), region = 44  ;;  %s2109_s1 = sld [smem:[#allocation9_spill]] (!%p1205_p13) }
  0x1d   : > { %s1312_s19 = sshll.u32 %s268_s18, 6  ;;  %s1313_s20 = sshll.u32 %s268_s18, 7 }
  0x1e   : > { %s1766_s9 = scalar_lea.vmem %s2108_s0, %s1312_s19  ;;  %s1771_s14 = scalar_lea.vmem %s2099_s5, %s1313_s20 }
  0x21   : > { %v1321_v0 = vld [vmem:[%s1766_s9 + $0x38] sm:$0xff]  ;;  %vm452_vm0 = vcmask 261120   ;;  %v1320_v2 = vld [vmem:[%s1766_s9 + $0x30] sm:$0xff]  ;;  %v1319_v4 = vld [vmem:[%s1766_s9 + $0x28] sm:$0xff]  ;;  %v1649_v9 = vmov 0  }
  0x22   : > { %v493_v1 = vsel %vm452_vm0, %v1321_v0, 0  ;;  %v490_v3 = vsel %vm452_vm0, %v1320_v2, 0  ;;  %v487_v5 = vsel %vm452_vm0, %v1319_v4, 0  ;;  %v1318_v6 = vld [vmem:[%s1766_s9 + $0x20] sm:$0xff]  ;;  %v312_v7 = vld [vmem:[%s2096_s2 + $0x10] sm:$0xff]  ;;  %1486 = vset.pattern.permute.xlu1 %v1649_v9  ;;  %1485 = vset.pattern.permute.xlu0 %v1649_v9  ;;  %v1317_v11 = vld [vmem:[%s1766_s9 + $0x18] sm:$0xff] }
  0x23   : > { %495 = vmatpush.bf16.xpose.msra.mxu0 %v493_v1  ;;  %1377 = vmatpush.bf16.xpose.msra.mxu1 %v493_v1  ;;  %v310_v8 = vld [vmem:[%s2096_s2] sm:$0xff]  ;;  %v484_v10 = vsel %vm452_vm0, %v1318_v6, 0  ;;  %v481_v12 = vsel %vm452_vm0, %v1317_v11, 0  ;;  %v313_v13 = vld [vmem:[%s2096_s2 + $0x18] sm:$0xff]  ;;  %v311_v14 = vld [vmem:[%s2096_s2 + $0x8] sm:$0xff] }
  0x24   : > { %1378 = vmatpush.bf16.xpose.msra.mxu2 %v493_v1  ;;  %1379 = vmatpush.bf16.xpose.msra.mxu3 %v493_v1  ;;  %v1316_v15 = vld [vmem:[%s1766_s9 + $0x10] sm:$0xff]  ;;  %v317_v17 = vld [vmem:[%s2096_s2 + $0x38] sm:$0xff]  ;;  %v1315_v19 = vld [vmem:[%s1766_s9 + $0x8] sm:$0xff] }
  0x25   : > { %334 = vperm.xlu1 %1486, %v312_v7   ;;  %324 = vperm.xlu0 %1485, %v310_v8   ;;  %v478_v16 = vsel %vm452_vm0, %v1316_v15, 0  ;;  %v316_v18 = vld [vmem:[%s2096_s2 + $0x30] sm:$0xff]  ;;  %v475_v20 = vsel %vm452_vm0, %v1315_v19, 0  ;;  %v314_v21 = vld [vmem:[%s2096_s2 + $0x20] sm:$0xff]  ;;  %v319_v23 = vld [vmem:[%s2096_s2 + $0x48] sm:$0xff] }
  0x26   : > { %1487 = vset.pattern.permute.xlu2 %v1649_v9  ;;  %v320_v22 = vld [vmem:[%s2096_s2 + $0x50] sm:$0xff]  ;;  %v1314_v24 = vld [vmem:[%s1766_s9] sm:$0xff]  ;;  %v315_v26 = vld [vmem:[%s2096_s2 + $0x28] sm:$0xff] }
  0x27   : > { %344 = vperm.xlu2 %1487, %v314_v21   ;;  %v472_v25 = vsel %vm452_vm0, %v1314_v24, 0  ;;  %v1322_v27 = vld [vmem:[%s2109_s1] sm:$0xff]  ;;  %v1323_v28 = vld [vmem:[%s2109_s1 + $0x8] sm:$0xff]  ;;  %v1324_v29 = vld [vmem:[%s2109_s1 + $0x10] sm:$0xff] }
  0x28   : > { %v1326_v30 = vld [vmem:[%s2109_s1 + $0x20] sm:$0xff]  ;;  %v321_v32 = vld [vmem:[%s2096_s2 + $0x58] sm:$0xff]  ;;  %v1327_v34 = vld [vmem:[%s2109_s1 + $0x28] sm:$0xff] }
  0x29   : > { %v318_v31 = vld [vmem:[%s2096_s2 + $0x40] sm:$0xff]  ;;  %v1325_v33 = vld [vmem:[%s2109_s1 + $0x18] sm:$0xff] }
  0x2b   : > { %496 = vmatpush.bf16.xpose.msra.mxu0 %v490_v3  ;;  %1380 = vmatpush.bf16.xpose.msra.mxu1 %v490_v3 }
  0x2c   : > { %1381 = vmatpush.bf16.xpose.msra.mxu2 %v490_v3  ;;  %1382 = vmatpush.bf16.xpose.msra.mxu3 %v490_v3 }
  0x2d   : > { %339 = vperm.xlu1 %1486, %v313_v13   ;;  %329 = vperm.xlu0 %1485, %v311_v14  }
  0x2f   : > { %349 = vperm.xlu2 %1487, %v315_v26  }
  0x33   : > { %497 = vmatpush.bf16.xpose.msra.mxu0 %v487_v5  ;;  %1383 = vmatpush.bf16.xpose.msra.mxu1 %v487_v5 }
  0x34   : > { %1384 = vmatpush.bf16.xpose.msra.mxu2 %v487_v5  ;;  %1385 = vmatpush.bf16.xpose.msra.mxu3 %v487_v5 }
  0x35   : > { %359 = vperm.xlu1 %1486, %v317_v17   ;;  %354 = vperm.xlu0 %1485, %v316_v18  }
  0x37   : > { %364 = vperm.xlu2 %1487, %v318_v31  }
  0x3b   : > { %498 = vmatpush.bf16.xpose.msra.mxu0 %v484_v10  ;;  %1386 = vmatpush.bf16.xpose.msra.mxu1 %v484_v10 }
  0x3c   : > { %1387 = vmatpush.bf16.xpose.msra.mxu2 %v484_v10  ;;  %1388 = vmatpush.bf16.xpose.msra.mxu3 %v484_v10 }
  0x3d   : > { %374 = vperm.xlu1 %1486, %v320_v22   ;;  %369 = vperm.xlu0 %1485, %v319_v23  }
  0x3f   : > { %379 = vperm.xlu2 %1487, %v321_v32  }
  0x43   : > { %499 = vmatpush.bf16.xpose.msra.mxu0 %v481_v12  ;;  %1389 = vmatpush.bf16.xpose.msra.mxu1 %v481_v12 }
  0x44   : > { %1390 = vmatpush.bf16.xpose.msra.mxu2 %v481_v12  ;;  %1391 = vmatpush.bf16.xpose.msra.mxu3 %v481_v12 }
  0x4b   : > { %500 = vmatpush.bf16.xpose.msra.mxu0 %v478_v16  ;;  %1392 = vmatpush.bf16.xpose.msra.mxu1 %v478_v16 }
  0x4c   : > { %1393 = vmatpush.bf16.xpose.msra.mxu2 %v478_v16  ;;  %1394 = vmatpush.bf16.xpose.msra.mxu3 %v478_v16 }
  0x53   : > { %501 = vmatpush.bf16.xpose.msra.mxu0 %v475_v20  ;;  %1395 = vmatpush.bf16.xpose.msra.mxu1 %v475_v20 }
  0x54   : > { %1396 = vmatpush.bf16.xpose.msra.mxu2 %v475_v20  ;;  %1397 = vmatpush.bf16.xpose.msra.mxu3 %v475_v20 }
  0x5b   : > { %502 = vmatpush.bf16.xpose.msra.mxu0 %v472_v25  ;;  %1398 = vmatpush.bf16.xpose.msra.mxu1 %v472_v25 }
  0x5c   : > { %1399 = vmatpush.bf16.xpose.msra.mxu2 %v472_v25  ;;  %1400 = vmatpush.bf16.xpose.msra.mxu3 %v472_v25 }
  0x62   : > { %1262 = vmatmul.msk.bf16.vlgmr.msra.gmra.mxu0 %vm452_vm0, %v1322_v27  ;;  %1263 = vmatmul.msk.bf16.vlgmr.msra.gmra.mxu1 %vm452_vm0, %v1323_v28 }
  0x63   : > { %1264 = vmatmul.msk.bf16.vlgmr.msra.gmra.mxu2 %vm452_vm0, %v1324_v29  ;;  %1266 = vmatmul.msk.bf16.vlgmr.msra.gmra.mxu3 %vm452_vm0, %v1326_v30 }
  0x73   : > { %1265 = vmatmul.msk.bf16.gmra.mxu2 %vm452_vm0, %v1325_v33  ;;  %1267 = vmatmul.msk.bf16.gmra.mxu3 %vm452_vm0, %v1327_v34 }
  0x81   : > { %v345_v36 = vpop.permute.xlu2 %344 }
  0x89   : > { %v350_v39 = vpop.permute.xlu2 %349 }
  0x91   : > { %v365_v46 = vpop.permute.xlu2 %364 }
  0x97   : > { %v325_v35 = vpop.permute.xlu0 %324  ;;  %v335_v37 = vpop.permute.xlu1 %334 }
  0x99   : > { %v380_v2 = vpop.permute.xlu2 %379 }
  0x9f   : > { %v330_v38 = vpop.permute.xlu0 %329  ;;  %v340_v44 = vpop.permute.xlu1 %339 }
  0xa7   : > { %v355_v45 = vpop.permute.xlu0 %354  ;;  %v360_v55 = vpop.permute.xlu1 %359 }
  0xaf   : > { %v370_v56 = vpop.permute.xlu0 %369  ;;  %v375_v61 = vpop.permute.xlu1 %374 }
  0xdf   : > { %v504_v40 = vpop.f32.mrf.mxu0  ;;  %v509_v41 = vpop.f32.mrf.mxu1 }
  0xe0   : > { %v505_v42 = vadd.f32 %v504_v40, %v325_v35  ;;  %v510_v43 = vadd.f32 %v509_v41, %v335_v37 }
  0xe2   : > { %534 = vst [vmem:[#allocation2] sm:$0xff] %v505_v42 }
  0xe3   : > { %536 = vst [vmem:[#allocation2 + $0x10] sm:$0xff] %v510_v43 }
  0xe6   : > { %v514_v47 = vpop.f32.mrf.mxu2  ;;  %v524_v48 = vpop.f32.mrf.mxu3 }
  0xe7   : > { %v515_v49 = vadd.f32 %v514_v47, %v345_v36  ;;  %v525_v50 = vadd.f32 %v524_v48, %v365_v46  ;;  %v506_v51 = vpop.f32.mrf.mxu0  ;;  %v511_v52 = vpop.f32.mrf.mxu1 }
  0xe8   : > { %v507_v53 = vadd.f32 %v506_v51, %v330_v38  ;;  %v512_v54 = vadd.f32 %v511_v52, %v340_v44 }
  0xe9   : > { %538 = vst [vmem:[#allocation2 + $0x20] sm:$0xff] %v515_v49 }
  0xea   : > { %542 = vst [vmem:[#allocation2 + $0x40] sm:$0xff] %v525_v50 }
  0xeb   : > { %535 = vst [vmem:[#allocation2 + $0x8] sm:$0xff] %v507_v53 }
  0xec   : > { %537 = vst [vmem:[#allocation2 + $0x18] sm:$0xff] %v512_v54 }
  0xee   : > { %v516_v57 = vpop.f32.mrf.mxu2  ;;  %v526_v58 = vpop.f32.mrf.mxu3 }
  0xef   : > { %v517_v59 = vadd.f32 %v516_v57, %v350_v39  ;;  %v527_v60 = vadd.f32 %v526_v58, %v370_v56 }
  0xf1   : > { %539 = vst [vmem:[#allocation2 + $0x28] sm:$0xff] %v517_v59 }
  0xf2   : > { %543 = vst [vmem:[#allocation2 + $0x48] sm:$0xff] %v527_v60 }
  0xf6   : > { %v519_v62 = vpop.f32.mrf.mxu2  ;;  %v529_v63 = vpop.f32.mrf.mxu3 }
  0xf7   : > { %v520_v0 = vadd.f32 %v519_v62, %v355_v45  ;;  %v530_v1 = vadd.f32 %v529_v63, %v375_v61 }
  0xf9   : > { %540 = vst [vmem:[#allocation2 + $0x30] sm:$0xff] %v520_v0 }
  0xfa   : > { %544 = vst [vmem:[#allocation2 + $0x50] sm:$0xff] %v530_v1 }
  0xfe   : > { %v521_v3 = vpop.f32.mrf.mxu2  ;;  %v531_v4 = vpop.f32.mrf.mxu3 }
  0xff   : > { %v522_v5 = vadd.f32 %v521_v3, %v360_v55  ;;  %v532_v6 = vadd.f32 %v531_v4, %v380_v2 }
 0x101   : > { %541 = vst [vmem:[#allocation2 + $0x38] sm:$0xff] %v522_v5 }
 0x102   : > { %545 = vst [vmem:[#allocation2 + $0x58] sm:$0xff] %v532_v6 }
 0x103 PF: > { %s1268_s16 = sshll.u32 %s1631_s24, 3  ;;  %vm589_vm1 = vcmask 64512   ;;  %v703_v24 = vlaneseq  ;;  %p1289_p0 = scmp.ne.s32.totalorder %s1631_s24, 3 }
 0x104   : > { %s1855_s18 = scalar_lea.vmem [#allocation2], %s1268_s16  ;;  %s920_s19 = scalar_lea.vmem [#allocation3], %s1268_s16 }
 0x105   : > { %v704_v26 = vand.u32 127, %v703_v24 }
 0x107   : > { %vm705_vm2 = vcmp.lt.s32.totalorder %v704_v26, 8 }
 0x109   : > { %v548_v7 = vld [vmem:[%s1855_s18] sm:$0xff] }
 0x10a   : > { %v1270_v8 = vld [vmem:[%s1855_s18 + $0x20] sm:$0xff]  ;;  %557 = vxpose.xlu0.b32.start.end [1/1] (short) %v548_v7, 128 }
 0x10b   : > { %653 = vmatpush.msra.mxu0 %v1270_v8  ;;  %1401 = vmatpush.msra.mxu2 %v1270_v8 }
 0x10c   : > { %1402 = vmatpush.msra.mxu3 %v1270_v8 }
 0x1ae   : > { %v573_v9 = vpop.trf.xlu0 }
 0x1af   : > { %1273 = vmatmul.msk.f32.vlgmr.msra.gmra.mxu0 %vm589_vm1, %v573_v9 }
 0x1b6   : > { %v574_v10 = vpop.trf.xlu0 }
 0x1b7   : > { %1274 = vmatmul.msk.f32.gmra.mxu0 %vm589_vm1, %v574_v10 }
 0x1be   : > { %v575_v11 = vpop.trf.xlu0 }
 0x1bf   : > { %1275 = vmatmul.msk.f32.gmra.mxu0 %vm589_vm1, %v575_v11 }
 0x1c6   : > { %v576_v12 = vpop.trf.xlu0 }
 0x1c7   : > { %1276 = vmatmul.msk.f32.gmra.mxu0 %vm589_vm1, %v576_v12 }
 0x1ce   : > { %v577_v13 = vpop.trf.xlu0 }
 0x1cf   : > { %1277 = vmatmul.msk.f32.gmra.mxu0 %vm589_vm1, %v577_v13 }
 0x1d6   : > { %v578_v14 = vpop.trf.xlu0 }
 0x1d7   : > { %1278 = vmatmul.msk.f32.gmra.mxu0 %vm589_vm1, %v578_v14 }
 0x1de   : > { %v579_v15 = vpop.trf.xlu0 }
 0x1df   : > { %1279 = vmatmul.msk.f32.gmra.mxu0 %vm589_vm1, %v579_v15 }
 0x1e6   : > { %v580_v16 = vpop.trf.xlu0 }
 0x1e7   : > { %1280 = vmatmul.msk.f32.vlgmr.msra.gmra.mxu2 %vm589_vm1, %v580_v16 }
 0x1ee   : > { %v581_v17 = vpop.trf.xlu0 }
 0x1ef   : > { %1281 = vmatmul.msk.f32.gmra.mxu2 %vm589_vm1, %v581_v17 }
 0x1f6   : > { %v582_v18 = vpop.trf.xlu0 }
 0x1f7   : > { %1282 = vmatmul.msk.f32.gmra.mxu2 %vm589_vm1, %v582_v18 }
 0x1fe   : > { %v583_v19 = vpop.trf.xlu0 }
 0x1ff   : > { %1283 = vmatmul.msk.f32.gmra.mxu2 %vm589_vm1, %v583_v19 }
 0x206   : > { %v584_v20 = vpop.trf.xlu0 }
 0x207   : > { %1284 = vmatmul.msk.f32.gmra.mxu2 %vm589_vm1, %v584_v20 }
 0x20e   : > { %v585_v21 = vpop.trf.xlu0 }
 0x20f   : > { %1285 = vmatmul.msk.f32.gmra.mxu2 %vm589_vm1, %v585_v21 }
 0x216   : > { %v586_v22 = vpop.trf.xlu0 }
 0x217   : > { %1286 = vmatmul.msk.f32.gmra.mxu2 %vm589_vm1, %v586_v22 }
 0x21e   : > { %v587_v23 = vpop.trf.xlu0 }
 0x21f   : > { %1287 = vmatmul.msk.f32.vlgmr.msra.gmra.mxu3 %vm589_vm1, %v587_v23 }
 0x226   : > { %v588_v25 = vpop.trf.xlu0 }
 0x227   : > { %1288 = vmatmul.msk.f32.gmra.mxu3 %vm589_vm1, %v588_v25 }
 0x22c   : > { %v655_v27 = vpop.f32.mrf.mxu0 }
 0x22d   : > { %v1876_v28 = vsel %vm705_vm2, %v655_v27, -1e+30 }
 0x234   : > { %v658_v33 = vpop.f32.mrf.mxu0 }
 0x235   : > { %v1907_v57 = vsel %vm705_vm2, %v658_v33, -1e+30 }
 0x23c   : > { %v661_v35 = vpop.f32.mrf.mxu0 }
 0x23d   : > { %v1899_v55 = vsel %vm705_vm2, %v661_v35, -1e+30 }
 0x244   : > { %v664_v39 = vpop.f32.mrf.mxu0 }
 0x245   : > { %v711_v52 = vsel %vm705_vm2, %v664_v39, -1e+30 }
 0x24c   : > { %v667_v43 = vpop.f32.mrf.mxu0 }
 0x24d   : > { %v1910_v58 = vsel %vm705_vm2, %v667_v43, -1e+30 }
 0x254   : > { %v670_v49 = vpop.f32.mrf.mxu0 }
 0x255   : > { %v713_v50 = vsel %vm705_vm2, %v670_v49, -1e+30 }
 0x25c   : > { %v673_v54 = vpop.f32.mrf.mxu0 }
 0x25d   : > { %v1902_v56 = vsel %vm705_vm2, %v673_v54, -1e+30 }
 0x26a   : > { %v676_v29 = vpop.f32.mrf.mxu2 }
 0x26b   : > { %v715_v46 = vsel %vm705_vm2, %v676_v29, -1e+30 }
 0x272   : > { %v679_v30 = vpop.f32.mrf.mxu2 }
 0x273   : > { %v1895_v53 = vsel %vm705_vm2, %v679_v30, -1e+30 }
 0x27a   : > { %v682_v31 = vpop.f32.mrf.mxu2 }
 0x27b   : > { %v717_v41 = vsel %vm705_vm2, %v682_v31, -1e+30 }
 0x282   : > { %v685_v32 = vpop.f32.mrf.mxu2 }
 0x283   : > { %v1890_v51 = vsel %vm705_vm2, %v685_v32, -1e+30 }
 0x28a   : > { %v688_v34 = vpop.f32.mrf.mxu2 }
 0x28b   : > { %v719_v38 = vsel %vm705_vm2, %v688_v34, -1e+30 }
 0x292   : > { %v691_v36 = vpop.f32.mrf.mxu2 }
 0x293   : > { %v1879_v37 = vsel %vm705_vm2, %v691_v36, -1e+30 }
 0x294   : > { %748 = vmax.xlane.f32.xlu2 %v1879_v37 }
 0x29a   : > { %v694_v44 = vpop.f32.mrf.mxu2 }
 0x29b   : > { %v721_v47 = vsel %vm705_vm2, %v694_v44, -1e+30 }
 0x29c   : > { %746 = vmax.xlane.f32.xlu2 %v719_v38 }
 0x2a2   : > { %v697_v40 = vpop.f32.mrf.mxu3 }
 0x2a3   : > { %v722_v42 = vsel %vm705_vm2, %v697_v40, -1e+30 }
 0x2a4   : > { %742 = vmax.xlane.f32.xlu2 %v717_v41  ;;  %752 = vmax.xlane.f32.xlu1 %v722_v42 }
 0x2aa   : > { %v700_v45 = vpop.f32.mrf.mxu3 }
 0x2ab   : > { %v723_v48 = vsel %vm705_vm2, %v700_v45, -1e+30 }
 0x2ac   : > { %738 = vmax.xlane.f32.xlu2 %v715_v46  ;;  %750 = vmax.xlane.f32.xlu1 %v721_v47 }
 0x2ad   : > { %754 = vmax.xlane.f32.xlu0 %v723_v48 }
 0x2b4   : > { %734 = vmax.xlane.f32.xlu2 %v713_v50  ;;  %744 = vmax.xlane.f32.xlu1 %v1890_v51 }
 0x2bc   : > { %730 = vmax.xlane.f32.xlu2 %v711_v52  ;;  %740 = vmax.xlane.f32.xlu1 %v1895_v53 }
 0x2c4   : > { %728 = vmax.xlane.f32.xlu2 %v1899_v55  ;;  %736 = vmax.xlane.f32.xlu1 %v1902_v56 }
 0x2cc   : > { %726 = vmax.xlane.f32.xlu2 %v1907_v57  ;;  %732 = vmax.xlane.f32.xlu1 %v1910_v58 }
 0x2d4   : > { %724 = vmax.xlane.f32.xlu2 %v1876_v28 }
 0x307   : > { %v749_v59 = vpop.xlane.xlu2 %748 }
 0x308   : > { %v768_v23 = vsub.f32 %v1879_v37, %v749_v59 }
 0x30a   : > { %v796_v27 = vmul.f32 1.442695, %v768_v23 }
 0x30f   : > { %v747_v60 = vpop.xlane.xlu2 %746 }
 0x310   : > { %v767_v61 = vsub.f32 %v719_v38, %v747_v60 }
 0x312   : > { %v794_v62 = vmul.f32 1.442695, %v767_v61 }
 0x314   : > { %1488 = vpow2.f32 %v794_v62 }
 0x317   : > { %v743_v63 = vpop.xlane.xlu2 %742  ;;  %v753_v0 = vpop.xlane.xlu1 %752 }
 0x318   : > { %v765_v1 = vsub.f32 %v717_v41, %v743_v63  ;;  %v770_v2 = vsub.f32 %v722_v42, %v753_v0 }
 0x31a   : > { %v1915_v3 = vpop.eup %1488  ;;  %v790_v4 = vmul.f32 1.442695, %v765_v1  ;;  %v800_v5 = vmul.f32 1.442695, %v770_v2 }
 0x31b   : > { %826 = vadd.xlane.f32.xlu2 %v1915_v3 }
 0x31c   : > { %1490 = vpow2.f32 %v790_v4 }
 0x31d   : > { %1492 = vpow2.f32 %v800_v5 }
 0x31f   : > { %v739_v6 = vpop.xlane.xlu2 %738  ;;  %v751_v13 = vpop.xlane.xlu1 %750 }
 0x320   : > { %v763_v7 = vsub.f32 %v715_v46, %v739_v6  ;;  %v755_v8 = vpop.xlane.xlu0 %754  ;;  %v769_v15 = vsub.f32 %v721_v47, %v751_v13 }
 0x321   : > { %v771_v9 = vsub.f32 %v723_v48, %v755_v8 }
 0x322   : > { %v1918_v10 = vpop.eup %1490  ;;  %v786_v11 = vmul.f32 1.442695, %v763_v7  ;;  %v798_v19 = vmul.f32 1.442695, %v769_v15 }
 0x323   : > { %v1920_v12 = vpop.eup %1492  ;;  %v802_v14 = vmul.f32 1.442695, %v771_v9  ;;  %822 = vadd.xlane.f32.xlu2 %v1918_v10 }
 0x324   : > { %1494 = vpow2.f32 %v786_v11  ;;  %832 = vadd.xlane.f32.xlu1 %v1920_v12 }
 0x325   : > { %1496 = vpow2.f32 %v802_v14 }
 0x327   : > { %v735_v16 = vpop.xlane.xlu2 %734  ;;  %v745_v22 = vpop.xlane.xlu1 %744 }
 0x328   : > { %v761_v17 = vsub.f32 %v713_v50, %v735_v16  ;;  %v766_v31 = vsub.f32 %v1890_v51, %v745_v22 }
 0x32a   : > { %v1924_v18 = vpop.eup %1494  ;;  %v782_v20 = vmul.f32 1.442695, %v761_v17  ;;  %v792_v35 = vmul.f32 1.442695, %v766_v31 }
 0x32b   : > { %818 = vadd.xlane.f32.xlu2 %v1924_v18  ;;  %v1927_v21 = vpop.eup %1496 }
 0x32c   : > { %1498 = vpow2.f32 %v782_v20  ;;  %834 = vadd.xlane.f32.xlu1 %v1927_v21 }
 0x32d   : > { %1500 = vpow2.f32 %v798_v19 }
 0x32f   : > { %v731_v24 = vpop.xlane.xlu2 %730  ;;  %v741_v32 = vpop.xlane.xlu1 %740 }
 0x330   : > { %v759_v25 = vsub.f32 %v711_v52, %v731_v24  ;;  %v764_v37 = vsub.f32 %v1895_v53, %v741_v32 }
 0x332   : > { %v1931_v26 = vpop.eup %1498  ;;  %v778_v29 = vmul.f32 1.442695, %v759_v25  ;;  %v788_v41 = vmul.f32 1.442695, %v764_v37 }
 0x333   : > { %814 = vadd.xlane.f32.xlu2 %v1931_v26  ;;  %v1934_v30 = vpop.eup %1500 }
 0x334   : > { %1502 = vpow2.f32 %v778_v29  ;;  %830 = vadd.xlane.f32.xlu1 %v1934_v30 }
 0x335   : > { %1504 = vpow2.f32 %v796_v27 }
 0x336   : > { %1506 = vpow2.f32 %v792_v35 }
 0x337   : > { %v729_v33 = vpop.xlane.xlu2 %728  ;;  %v737_v40 = vpop.xlane.xlu1 %736 }
 0x338   : > { %v762_v44 = vsub.f32 %v1902_v56, %v737_v40  ;;  %v758_v52 = vsub.f32 %v1899_v55, %v729_v33 }
 0x33a   : > { %v1938_v34 = vpop.eup %1502  ;;  %v784_v46 = vmul.f32 1.442695, %v762_v44  ;;  %v776_v53 = vmul.f32 1.442695, %v758_v52 }
 0x33b   : > { %810 = vadd.xlane.f32.xlu2 %v1938_v34  ;;  %v1941_v36 = vpop.eup %1504 }
 0x33c   : > { %828 = vadd.xlane.f32.xlu1 %v1941_v36  ;;  %v1946_v43 = vpop.eup %1506 }
 0x33f   : > { %v727_v38 = vpop.xlane.xlu2 %726  ;;  %v733_v47 = vpop.xlane.xlu1 %732 }
 0x340   : > { %v757_v39 = vsub.f32 %v1907_v57, %v727_v38  ;;  %v760_v49 = vsub.f32 %v1910_v58, %v733_v47 }
 0x342   : > { %v774_v42 = vmul.f32 1.442695, %v757_v39  ;;  %v780_v50 = vmul.f32 1.442695, %v760_v49 }
 0x344   : > { %1508 = vpow2.f32 %v774_v42  ;;  %824 = vadd.xlane.f32.xlu1 %v1946_v43 }
 0x345   : > { %1510 = vpow2.f32 %v788_v41 }
 0x346   : > { %1512 = vpow2.f32 %v784_v46 }
 0x347   : > { %1514 = vpow2.f32 %v780_v50  ;;  %v725_v54 = vpop.xlane.xlu2 %724 }
 0x348   : > { %1516 = vpow2.f32 %v776_v53  ;;  %v756_v57 = vsub.f32 %v1876_v28, %v725_v54  ;;  %v1272_v53 = vld [vmem:[%s1855_s18 + $0x40] sm:$0xff] }
 0x34a   : > { %v1950_v45 = vpop.eup %1508  ;;  %v772_v59 = vmul.f32 1.442695, %v756_v57 }
 0x34b   : > { %806 = vadd.xlane.f32.xlu2 %v1950_v45  ;;  %v1953_v48 = vpop.eup %1510 }
 0x34c   : > { %820 = vadd.xlane.f32.xlu1 %v1953_v48  ;;  %v1957_v51 = vpop.eup %1512  ;;  %1518 = vpow2.f32 %v772_v59 }
 0x34d   : > { %v1961_v56 = vpop.eup %1514 }
 0x34e   : > { %v1965_v60 = vpop.eup %1516 }
 0x352   : > { %v1968_v58 = vpop.eup %1518 }
 0x354   : > { %816 = vadd.xlane.f32.xlu1 %v1957_v51 }
 0x35c   : > { %812 = vadd.xlane.f32.xlu1 %v1961_v56 }
 0x364   : > { %808 = vadd.xlane.f32.xlu1 %v1965_v60 }
 0x36c   : > { %804 = vadd.xlane.f32.xlu1 %v1968_v58 }
 0x38e   : > { %v827_v0 = vpop.xlane.xlu2 %826 }
 0x396   : > { %v823_v8 = vpop.xlane.xlu2 %822 }
 0x397   : > { %v833_v55 = vpop.xlane.xlu1 %832 }
 0x398   : > { %1520 = vrcp.f32 %v833_v55 }
 0x39e   : > { %v1521_v62 = vpop.eup %1520  ;;  %v819_v15 = vpop.xlane.xlu2 %818 }
 0x39f   : > { %v835_v61 = vpop.xlane.xlu1 %834  ;;  %v866_v2 = vmul.f32 %v1521_v62, %v1920_v12 }
 0x3a0   : > { %1522 = vrcp.f32 %v835_v61 }
 0x3a6   : > { %v1523_v63 = vpop.eup %1522  ;;  %v815_v24 = vpop.xlane.xlu2 %814 }
 0x3a7   : > { %v831_v1 = vpop.xlane.xlu1 %830  ;;  %v867_v28 = vmul.f32 %v1523_v63, %v1927_v21 }
 0x3a8   : > { %1524 = vrcp.f32 %v831_v1 }
 0x3a9   : > { %900 = vmatpush.xpose.msra.mxu1 %v867_v28  ;;  %v1368_v4 = vpack.c.bf16 %v867_v28, %v866_v2 }
 0x3ab   : > { %1376 = vst [vmem:[%s1773_s8 + $0x38] sm:$0xff] %v1368_v4  }
 0x3ad   : > { %901 = vmatpush.xpose.msra.mxu1 %v866_v2 }
 0x3ae   : > { %v1525_v5 = vpop.eup %1524  ;;  %v811_v33 = vpop.xlane.xlu2 %810 }
 0x3af   : > { %v829_v6 = vpop.xlane.xlu1 %828  ;;  %v865_v7 = vmul.f32 %v1525_v5, %v1934_v30 }
 0x3b0   : > { %1526 = vrcp.f32 %v829_v6 }
 0x3b1   : > { %902 = vmatpush.xpose.msra.mxu1 %v865_v7  ;;  %1528 = vrcp.f32 %v827_v0 }
 0x3b6   : > { %v1527_v9 = vpop.eup %1526 }
 0x3b7   : > { %v825_v11 = vpop.xlane.xlu1 %824  ;;  %v864_v13 = vmul.f32 %v1527_v9, %v1941_v36  ;;  %v1529_v14 = vpop.eup %1528 }
 0x3b8   : > { %1530 = vrcp.f32 %v825_v11  ;;  %v863_v16 = vmul.f32 %v1529_v14, %v1915_v3 }
 0x3b9   : > { %v1363_v12 = vpack.c.bf16 %v865_v7, %v864_v13  ;;  %903 = vmatpush.xpose.msra.mxu1 %v864_v13  ;;  %1532 = vrcp.f32 %v823_v8 }
 0x3bb   : > { %1375 = vst [vmem:[%s1773_s8 + $0x30] sm:$0xff] %v1363_v12  }
 0x3bd   : > { %904 = vmatpush.xpose.msra.mxu1 %v863_v16 }
 0x3be   : > { %v1531_v17 = vpop.eup %1530  ;;  %v807_v40 = vpop.xlane.xlu2 %806 }
 0x3bf   : > { %v821_v19 = vpop.xlane.xlu1 %820  ;;  %v862_v20 = vmul.f32 %v1531_v17, %v1946_v43  ;;  %v1533_v21 = vpop.eup %1532 }
 0x3c0   : > { %1534 = vrcp.f32 %v821_v19  ;;  %v861_v23 = vmul.f32 %v1533_v21, %v1918_v10 }
 0x3c1   : > { %v1358_v22 = vpack.c.bf16 %v863_v16, %v862_v20  ;;  %905 = vmatpush.xpose.msra.mxu1 %v862_v20  ;;  %1536 = vrcp.f32 %v819_v15 }
 0x3c3   : > { %1374 = vst [vmem:[%s1773_s8 + $0x28] sm:$0xff] %v1358_v22  }
 0x3c5   : > { %906 = vmatpush.xpose.msra.mxu1 %v861_v23 }
 0x3c6   : > { %v1535_v25 = vpop.eup %1534 }
 0x3c7   : > { %v817_v27 = vpop.xlane.xlu1 %816  ;;  %v860_v3 = vmul.f32 %v1535_v25, %v1953_v48  ;;  %v1537_v29 = vpop.eup %1536 }
 0x3c8   : > { %1538 = vrcp.f32 %v817_v27  ;;  %v859_v31 = vmul.f32 %v1537_v29, %v1924_v18 }
 0x3c9   : > { %v1353_v30 = vpack.c.bf16 %v861_v23, %v860_v3  ;;  %907 = vmatpush.xpose.msra.mxu1 %v860_v3  ;;  %1540 = vrcp.f32 %v815_v24 }
 0x3cb   : > { %1373 = vst [vmem:[%s1773_s8 + $0x20] sm:$0xff] %v1353_v30  }
 0x3cd   : > { %908 = vmatpush.xpose.msra.mxu1 %v859_v31 }
 0x3ce   : > { %v1539_v32 = vpop.eup %1538 }
 0x3cf   : > { %v813_v35 = vpop.xlane.xlu1 %812  ;;  %v858_v10 = vmul.f32 %v1539_v32, %v1957_v51  ;;  %v1541_v36 = vpop.eup %1540 }
 0x3d0   : > { %1542 = vrcp.f32 %v813_v35  ;;  %v857_v38 = vmul.f32 %v1541_v36, %v1931_v26 }
 0x3d1   : > { %v1348_v37 = vpack.c.bf16 %v859_v31, %v858_v10  ;;  %909 = vmatpush.xpose.msra.mxu1 %v858_v10  ;;  %1544 = vrcp.f32 %v811_v33 }
 0x3d3   : > { %1372 = vst [vmem:[%s1773_s8 + $0x18] sm:$0xff] %v1348_v37  }
 0x3d5   : > { %910 = vmatpush.xpose.msra.mxu1 %v857_v38 }
 0x3d6   : > { %v1543_v39 = vpop.eup %1542 }
 0x3d7   : > { %v809_v41 = vpop.xlane.xlu1 %808  ;;  %v856_v18 = vmul.f32 %v1543_v39, %v1961_v56  ;;  %v1545_v42 = vpop.eup %1544 }
 0x3d8   : > { %1546 = vrcp.f32 %v809_v41  ;;  %v855_v44 = vmul.f32 %v1545_v42, %v1938_v34 }
 0x3d9   : > { %v1343_v43 = vpack.c.bf16 %v857_v38, %v856_v18  ;;  %911 = vmatpush.xpose.msra.mxu1 %v856_v18  ;;  %1548 = vrcp.f32 %v807_v40 }
 0x3db   : > { %1371 = vst [vmem:[%s1773_s8 + $0x10] sm:$0xff] %v1343_v43  }
 0x3dd   : > { %912 = vmatpush.xpose.msra.mxu1 %v855_v44 }
 0x3de   : > { %v1547_v46 = vpop.eup %1546 }
 0x3df   : > { %v805_v26 = vpop.xlane.xlu1 %804  ;;  %v854_v47 = vmul.f32 %v1547_v46, %v1965_v60  ;;  %v1549_v48 = vpop.eup %1548 }
 0x3e0   : > { %1550 = vrcp.f32 %v805_v26  ;;  %v853_v50 = vmul.f32 %v1549_v48, %v1950_v45 }
 0x3e1   : > { %v1338_v49 = vpack.c.bf16 %v855_v44, %v854_v47  ;;  %913 = vmatpush.xpose.msra.mxu1 %v854_v47 }
 0x3e3   : > { %1370 = vst [vmem:[%s1773_s8 + $0x8] sm:$0xff] %v1338_v49  }
 0x3e5   : > { %914 = vmatpush.xpose.msra.mxu1 %v853_v50 }
 0x3e6   : > { %v1551_v51 = vpop.eup %1550 }
 0x3e7   : > { %v852_v52 = vmul.f32 %v1551_v51, %v1968_v58 }
 0x3e9   : > { %v1333_v34 = vpack.c.bf16 %v853_v50, %v852_v52  ;;  %915 = vmatpush.xpose.msra.mxu1 %v852_v52 }
 0x3eb   : > { %1334 = vst [vmem:[%s1773_s8] sm:$0xff] %v1333_v34  }
 0x3ec   : > { %916 = vmatmul.f32.vlgmr.msra.gmra.mxu1 %v1272_v53 }
 0x466   : > { %925 = sbr.rel (%p1289_p0) target bundleno = 1568 (0x620), region = 48 }
 0x469   : > { %v917_v54 = vpop.f32.mrf.mxu1 }
 0x46a   : > { %921 = vst [vmem:[%s920_s19] sm:$0xff] %v917_v54 }
 0x46b   : > { %v1329_v45 = vld [vmem:[%s2097_s3 + $0x8] sm:$0xff]  ;;  %v1328_v60 = vld [vmem:[%s2097_s3] sm:$0xff]  ;;  %vm968_vm3 = vcmask 261120  }
 0x46c   : > { %999 = vmatpush.bf16.msra.mxu0 %v1329_v45  ;;  %1403 = vmatpush.bf16.msra.mxu1 %v1329_v45  ;;  %v1552_v6 = vld [vmem:[%s2098_s4] ss:$0 sm:$0xff] }
 0x46d   : > { %1404 = vmatpush.bf16.msra.mxu2 %v1329_v45  ;;  %1405 = vmatpush.bf16.msra.mxu3 %v1329_v45 }
 0x470   : > { %1000 = vmatpush.bf16.msra.mxu0 %v1328_v60  ;;  %1406 = vmatpush.bf16.msra.mxu1 %v1328_v60 }
 0x471   : > { %v926_v56 = vld [vmem:[#allocation3] sm:$0xff]  ;;  %v927_v57 = vld [vmem:[#allocation3 + $0x8] sm:$0xff]  ;;  %1407 = vmatpush.bf16.msra.mxu2 %v1328_v60  ;;  %1408 = vmatpush.bf16.msra.mxu3 %v1328_v60  ;;  %v928_v58 = vld [vmem:[#allocation3 + $0x10] sm:$0xff] }
 0x472   : > { %v930_v59 = vpack.c.bf16 %v927_v57, %v926_v56  ;;  %v929_v55 = vld [vmem:[#allocation3 + $0x18] sm:$0xff] }
 0x473   : > { %v931_v61 = vpack.c.bf16 %v929_v55, %v928_v58 }
 0x474   : > { %932 = vxpose.xlu0.c.b16.start [1/2] (short) %v930_v59, 128 }
 0x484   : > { %933 = vxpose.xlu0.c.b16.end [2/2] (short) %v931_v61, 128 }
 0x520   : > { %v940_v62 = vpop.trf.xlu0 }
 0x521   : > { %1298 = vmatmul.msk.bf16.vlgmr.msra.gmra.mxu0 %vm968_vm3, %v940_v62 }
 0x530   : > { %v941_v63 = vpop.trf.xlu0 }
 0x531   : > { %1299 = vmatmul.msk.bf16.gmra.mxu0 %vm968_vm3, %v941_v63 }
 0x540   : > { %v942_v0 = vpop.trf.xlu0 }
 0x541   : > { %1300 = vmatmul.msk.bf16.vlgmr.msra.gmra.mxu1 %vm968_vm3, %v942_v0 }
 0x550   : > { %v943_v1 = vpop.trf.xlu0 }
 0x551   : > { %1301 = vmatmul.msk.bf16.gmra.mxu1 %vm968_vm3, %v943_v1 }
 0x560   : > { %v944_v28 = vpop.trf.xlu0 }
 0x561   : > { %1302 = vmatmul.msk.bf16.vlgmr.msra.gmra.mxu2 %vm968_vm3, %v944_v28 }
 0x570   : > { %v945_v2 = vpop.trf.xlu0 }
 0x571   : > { %1303 = vmatmul.msk.bf16.gmra.mxu2 %vm968_vm3, %v945_v2 }
 0x580   : > { %v946_v4 = vpop.trf.xlu0 }
 0x581   : > { %1304 = vmatmul.msk.bf16.vlgmr.msra.gmra.mxu3 %vm968_vm3, %v946_v4 }
 0x590   : > { %v947_v5 = vpop.trf.xlu0 }
 0x591   : > { %1305 = vmatmul.msk.bf16.gmra.mxu3 %vm968_vm3, %v947_v5 }
 0x59e   : > { %v1002_v7 = vpop.f32.mrf.mxu0 }
 0x59f   : > { %v1003_v8 = vadd.f32 %v1552_v6, %v1002_v7 }
 0x5a1   : > { %1042 = vst.msk [vmem:[%s1771_s14] sm:$0xff] %vm968_vm3, %v1003_v8 }
 0x5a6   : > { %v1004_v9 = vpop.f32.mrf.mxu0 }
 0x5a7   : > { %v1005_v11 = vadd.f32 %v1552_v6, %v1004_v9 }
 0x5a9   : > { %1043 = vst.msk [vmem:[%s1771_s14 + $0x8] sm:$0xff] %vm968_vm3, %v1005_v11 }
 0x5ae   : > { %v1007_v13 = vpop.f32.mrf.mxu0 }
 0x5af   : > { %v1008_v14 = vadd.f32 %v1552_v6, %v1007_v13 }
 0x5b1   : > { %1044 = vst.msk [vmem:[%s1771_s14 + $0x10] sm:$0xff] %vm968_vm3, %v1008_v14 }
 0x5b6   : > { %v1009_v12 = vpop.f32.mrf.mxu0 }
 0x5b7   : > { %v1010_v15 = vadd.f32 %v1552_v6, %v1009_v12 }
 0x5b9   : > { %1045 = vst.msk [vmem:[%s1771_s14 + $0x18] sm:$0xff] %vm968_vm3, %v1010_v15 }
 0x5be   : > { %v1012_v16 = vpop.f32.mrf.mxu1 }
 0x5bf   : > { %v1013_v17 = vadd.f32 %v1552_v6, %v1012_v16 }
 0x5c1   : > { %1046 = vst.msk [vmem:[%s1771_s14 + $0x20] sm:$0xff] %vm968_vm3, %v1013_v17 }
 0x5c6   : > { %v1014_v19 = vpop.f32.mrf.mxu1 }
 0x5c7   : > { %v1015_v20 = vadd.f32 %v1552_v6, %v1014_v19 }
 0x5c9   : > { %1047 = vst.msk [vmem:[%s1771_s14 + $0x28] sm:$0xff] %vm968_vm3, %v1015_v20 }
 0x5ce   : > { %v1017_v21 = vpop.f32.mrf.mxu1 }
 0x5cf   : > { %v1018_v22 = vadd.f32 %v1552_v6, %v1017_v21 }
 0x5d1   : > { %1048 = vst.msk [vmem:[%s1771_s14 + $0x30] sm:$0xff] %vm968_vm3, %v1018_v22 }
 0x5d6   : > { %v1019_v23 = vpop.f32.mrf.mxu1 }
 0x5d7   : > { %v1020_v24 = vadd.f32 %v1552_v6, %v1019_v23 }
 0x5d9   : > { %1049 = vst.msk [vmem:[%s1771_s14 + $0x38] sm:$0xff] %vm968_vm3, %v1020_v24 }
 0x5e4   : > { %v1022_v25 = vpop.f32.mrf.mxu2 }
 0x5e5   : > { %v1023_v27 = vadd.f32 %v1552_v6, %v1022_v25 }
 0x5e7   : > { %1050 = vst.msk [vmem:[%s1771_s14 + $0x40] sm:$0xff] %vm968_vm3, %v1023_v27 }
 0x5ec   : > { %v1024_v3 = vpop.f32.mrf.mxu2 }
 0x5ed   : > { %v1025_v29 = vadd.f32 %v1552_v6, %v1024_v3 }
 0x5ef   : > { %1051 = vst.msk [vmem:[%s1771_s14 + $0x48] sm:$0xff] %vm968_vm3, %v1025_v29 }
 0x5f4   : > { %v1027_v30 = vpop.f32.mrf.mxu2 }
 0x5f5   : > { %v1028_v31 = vadd.f32 %v1552_v6, %v1027_v30 }
 0x5f7   : > { %1052 = vst.msk [vmem:[%s1771_s14 + $0x50] sm:$0xff] %vm968_vm3, %v1028_v31 }
 0x5fc   : > { %v1029_v32 = vpop.f32.mrf.mxu2 }
 0x5fd   : > { %v1030_v33 = vadd.f32 %v1552_v6, %v1029_v32 }
 0x5ff   : > { %1053 = vst.msk [vmem:[%s1771_s14 + $0x58] sm:$0xff] %vm968_vm3, %v1030_v33 }
 0x604   : > { %v1032_v35 = vpop.f32.mrf.mxu3 }
 0x605   : > { %v1033_v10 = vadd.f32 %v1552_v6, %v1032_v35 }
 0x607   : > { %1054 = vst.msk [vmem:[%s1771_s14 + $0x60] sm:$0xff] %vm968_vm3, %v1033_v10 }
 0x60c   : > { %v1034_v36 = vpop.f32.mrf.mxu3 }
 0x60d   : > { %v1035_v37 = vadd.f32 %v1552_v6, %v1034_v36 }
 0x60f   : > { %1055 = vst.msk [vmem:[%s1771_s14 + $0x68] sm:$0xff] %vm968_vm3, %v1035_v37 }
 0x614   : > { %v1037_v38 = vpop.f32.mrf.mxu3 }
 0x615   : > { %v1038_v39 = vadd.f32 %v1552_v6, %v1037_v38 }
 0x617   : > { %1056 = vst.msk [vmem:[%s1771_s14 + $0x70] sm:$0xff] %vm968_vm3, %v1038_v39 }
 0x61c   : > { %v1039_v40 = vpop.f32.mrf.mxu3 }
 0x61d   : > { %v1040_v41 = vadd.f32 %v1552_v6, %v1039_v40 }
 0x61f   : > { %1057 = vst.msk [vmem:[%s1771_s14 + $0x78] sm:$0xff] %vm968_vm3, %v1040_v41 }
 0x620 PF: > { %s1307_s17 = sshll.u32 %s1631_s24, 4  ;;  %s1308_s16 = sshll.u32 %s1635_s25, 6 }
 0x621   : > { %s1081_s18 = sshll.u32 %s1773_s8, 4  ;;  %s1078_s19 = sadd.s32 %s1308_s16, %s1307_s17  ;;  %s1082_s18 = int_to_ptr.vmem [resolvable:$true] %s1081_s18 }
 0x622   : > { %s1309_s20 = sshll.u32 %s1078_s19, 2  ;;  %s2110_s13 = sand.u32 1, %s1623_s22  }
 0x623   : > { %s1080_s12 = scalar_lea.hbm %s2100_s6, %s1309_s20  ;;  %s1064_s14 = scalar_lea.sflag [#allocation5], %s2110_s13 }
 0x624   : > { %s1083_s9 = sshll.u32 %s1080_s12, 4  ;;  %s1573_s8 = scalar_lea.hbm %s2100_s6, 512  ;;  %s1084_s9 = int_to_ptr.hbm [resolvable:$true] %s1083_s9 }
 0x625   : > { %s1567_s0 = sshra.s32 %s1084_s9, 4  ;;  %s1568_s0 = int_to_ptr.hbm [resolvable:$true] %s1567_s0 }
 0x626   : > { %s1569_s1 = scalar_lea.hbm %s1568_s0, 64  ;;  %p1574_p5 = scmp.lt.s32.totalorder %s1568_s0, %s2100_s6 }
 0x627   : > { %p1570_p1 = scmp.ne.s32.totalorder %s1568_s0, %s1569_s1  ;;  %p1575_p6 = scmp.lt.s32.totalorder %s1573_s8, %s1569_s1 }
 0x629   : > { %p1571_p2 = pnand %p1570_p1, %p1738_p3  ;;  %p1576_p7 = por %p1575_p6, %p1574_p5 }
 0x62b   : > { %p1572_p4 = pneg %p1571_p2 }
 0x62d   : > { %p1577_p9 = pnand %p1576_p7, %p1572_p4 }
 0x62f   : > { %1580 = shalt.err (!%p1577_p9)
}
 0x630   : > { %s1650_s19 = smov 64   ;;  %s1651_s20 = smov 4  }
 0x631   : > { %1409 = dma.vmem_to_hbm [thread:$0]  (%p1738_p3), %s1082_s18, 1024, %s1084_s9, %s1064_s14, %s1650_s19, %s1650_s19, %s1651_s20  }
 0x632 PF: > { %p1415_p10 = scmp.ge.s32.totalorder %s1647_s28, 2  ;;  %s1106_s29 = sand.u32 1, %s1619_s21  }
 0x633   : > { %s1107_s30 = scalar_lea.sflag [#allocation5], %s1106_s29 }
 0x634   : > { %p1412_p11 = pnand %p1415_p10, %p1747_p8 }
 0x636   : > { %p1413_p12 = pneg %p1412_p11 }
 0x638   : > { %1614 = dma.done.wait (%p1413_p12), %s1107_s30, 1024  }
 0x639   : > { %1616 = vsyncadd (%p1413_p12), %s1107_s30, 4294966272  ;;  %s20_s28 = sadd.s32 1, %s1647_s28   ;;  %s2111_s0 = sld [smem:[#allocation7_spill]] }
 0x63a   : > { %p17_p13 = scmp.ge.s32.totalorder %s20_s28, 10   ;;  %s2112_s21 = smov %s1623_s22 }
 0x63b   : > { %s2113_s22 = smov %s1627_s23  ;;  %s2114_s23 = smov %s1756_s15 }
 0x63c   : > { %s2115_s24 = smov %s1639_s26  ;;  %s2116_s25 = smov %s1643_s27 }
 0x63d   : > { %s2117_s26 = smov %s2120_s7  ;;  %19 = sbr.rel (!%p17_p13) target bundleno = 8 (0x8), region = 99 }
 0x63f   : > { %s2118_s27 = smov %s2111_s0 }
 0x642   :  { %1113 = vsyncpa [#allocation5], 1 }
 0x643   :  { %1115 = vsyncpa [#allocation5 + $0x1], 1 }

// kernel: tpu_custom_call.1
= control target key start
LH: loop header
LB: loop body
LE: loop exit
PB: predicated region body
PF: predicated region fallthrough
CT: control target
= control target key end

     0   :  { %s2094_s0 = inlined_call_operand.vmem [shape: bf16[2,128,32], index: 0, kind: input, shape index: {}]   ;;  %s2095_s1 = inlined_call_operand.vmem [shape: bf16[96,32], index: 1, kind: input, shape index: {}]   ;;  %s2096_s2 = inlined_call_operand.vmem [shape: f32[96,1], index: 2, kind: input, shape index: {}]   ;;  %s2097_s3 = inlined_call_operand.vmem [shape: bf16[32,32], index: 3, kind: input, shape index: {}]   ;;  %s2098_s4 = inlined_call_operand.vmem [shape: f32[1,32], index: 4, kind: input, shape index: {}]   ;;  %s2099_s5 = inlined_call_operand.vmem [shape: f32[2,128,32], index: 5, kind: output, shape index: {0}]   ;;  %s2100_s6 = inlined_call_operand.hbm [shape: bf16[2,4,128,128], index: 6, kind: output, shape index: {1}]  }
   0x1   :  { %2103 = sst [smem:[#allocation8_spill]] %s2094_s0 }
   0x2   :  { %2104 = sst [smem:[#allocation9_spill]] %s2095_s1 }
   0x3   :  { %12 = vsyncpa [#allocation5], 0 }
   0x4   :  { %14 = vsyncpa [#allocation5 + $0x1], 0  ;;  %s1687_s21 = smov 0   ;;  %s1689_s22 = smov 0  }
   0x5   :  { %s1691_s23 = smov 0   ;;  %s1693_s24 = smov 0  }
   0x6   :  { %s1695_s25 = smov 0   ;;  %s1697_s26 = smov 0  }
   0x7   :  { %s1699_s27 = smov 0   ;;  %s1701_s28 = smov 0  }
   0x8 LB: > { %s1195_s29 = sadd.s32 4294967295, %s1647_s28   ;;  %s1196_s30 = sadd.s32 4294967294, %s1647_s28   ;;  %s1647_s28 = sphi %s1701_s28, %s20_s28   ;;  %s1643_s27 = sphi %s1699_s27, %s2118_s27   ;;  %s1639_s26 = sphi %s1697_s26, %s2117_s26   ;;  %s1635_s25 = sphi %s1695_s25, %s2116_s25   ;;  %s1631_s24 = sphi %s1693_s24, %s2115_s24   ;;  %s1627_s23 = sphi %s1691_s23, %s2114_s23   ;;  %s1623_s22 = sphi %s1689_s22, %s2113_s22   ;;  %s1619_s21 = sphi %s1687_s21, %s2112_s21  }
   0x9   : > { %s29_s7 = sadd.s32 1, %s1639_s26  ;;  %s32_s8 = sadd.s32 1, %s1643_s27 }
   0xa   : > { %p30_p0 = scmp.ge.s32.totalorder %s29_s7, 4  ;;  %p187_p1 = scmp.ne.s32.totalorder %s1627_s23, %s1623_s22 }
   0xb   : > { %p188_p2 = scmp.eq.s32.totalorder %s1195_s29, 7  ;;  %p193_p5 = scmp.ne.s32.totalorder %s1623_s22, %s1619_s21 }
   0xc   : > { %s2120_s7 = smov (%p30_p0, %s29_s7), 0  ;;  %s2122_s8 = smov (!%p30_p0, %s32_s8), %s1643_s27 }
   0xd   : > { %s173_s9 = ssub.s32 %s1639_s26, %s2120_s7  ;;  %p1738_p3 = por %p188_p2, %p187_p1 }
   0xe   : > { %p34_p4 = scmp.ge.s32.totalorder %s2122_s8, 2  ;;  %p194_p6 = scmp.eq.s32.totalorder %s1196_s30, 7 }
   0xf   : > { %p1199_p7 = scmp.ge.s32.totalorder %s1647_s28, 1  ;;  %p232_p9 = scmp.lt.s32.totalorder %s1647_s28, 9 }
  0x10   : > { %s2124_s8 = smov (%p34_p4, %s2122_s8), 0  ;;  %p1747_p8 = por %p194_p6, %p193_p5 }
  0x11   : > { %2106 = sst [smem:[#allocation7_spill]] %s2124_s8  ;;  %s172_s12 = ssub.s32 %s1643_s27, %s2124_s8 }
  0x12   : > { %s177_s13 = sadd.s32 1, %s1627_s23  ;;  %s174_s14 = sor.u32 %s173_s9, %s172_s12 }
  0x13   : > { %p233_p10 = pnand %p1199_p7, %p232_p9  ;;  %p175_p11 = scmp.eq.s32.totalorder %s174_s14, 0 }
  0x14   : > { %s2102_s16 = sand.u32 (!%p233_p10), 1, %s1623_s22   ;;  %p267_p12 = scmp.lt.s32.totalorder (!%p233_p10), %s1635_s25, 1 }
  0x15   : > { %s1756_s15 = scalar_select %p175_p11, %s1627_s23, %s177_s13  }
  0x16   : > { %236 = sbr.rel (%p233_p10) target bundleno = 1586 (0x632), region = 40  ;;  %s1200_s17 = sshll.u32 (!%p233_p10), %s2102_s16, 6 }
  0x17   : > { %s2108_s0 = sld [smem:[#allocation8_spill]] (!%p233_p10)  ;;  %s1773_s8 = scalar_lea.vmem (!%p233_p10), [#allocation4], %s1200_s17 }
  0x18   : > { %p1205_p13 = scmp.ne.s32.totalorder (!%p233_p10), %s1631_s24, 0 }
  0x1b   : > { %s268_s18 = scalar_select %p267_p12, %s1635_s25, 1 }
  0x1c   : > { %281 = sbr.rel (%p1205_p13) target bundleno = 259 (0x103), region = 44  ;;  %s2109_s1 = sld [smem:[#allocation9_spill]] (!%p1205_p13) }
  0x1d   : > { %s1312_s19 = sshll.u32 %s268_s18, 6  ;;  %s1313_s20 = sshll.u32 %s268_s18, 7 }
  0x1e   : > { %s1766_s9 = scalar_lea.vmem %s2108_s0, %s1312_s19  ;;  %s1771_s14 = scalar_lea.vmem %s2099_s5, %s1313_s20 }
  0x21   : > { %v1321_v0 = vld [vmem:[%s1766_s9 + $0x38] sm:$0xff]  ;;  %vm452_vm0 = vcmask 261120   ;;  %v1320_v2 = vld [vmem:[%s1766_s9 + $0x30] sm:$0xff]  ;;  %v1319_v4 = vld [vmem:[%s1766_s9 + $0x28] sm:$0xff]  ;;  %v1649_v9 = vmov 0  }
  0x22   : > { %v493_v1 = vsel %vm452_vm0, %v1321_v0, 0  ;;  %v490_v3 = vsel %vm452_vm0, %v1320_v2, 0  ;;  %v487_v5 = vsel %vm452_vm0, %v1319_v4, 0  ;;  %v1318_v6 = vld [vmem:[%s1766_s9 + $0x20] sm:$0xff]  ;;  %v312_v7 = vld [vmem:[%s2096_s2 + $0x10] sm:$0xff]  ;;  %1486 = vset.pattern.permute.xlu1 %v1649_v9  ;;  %1485 = vset.pattern.permute.xlu0 %v1649_v9  ;;  %v1317_v11 = vld [vmem:[%s1766_s9 + $0x18] sm:$0xff] }
  0x23   : > { %495 = vmatpush.bf16.xpose.msra.mxu0 %v493_v1  ;;  %1377 = vmatpush.bf16.xpose.msra.mxu1 %v493_v1  ;;  %v310_v8 = vld [vmem:[%s2096_s2] sm:$0xff]  ;;  %v484_v10 = vsel %vm452_vm0, %v1318_v6, 0  ;;  %v481_v12 = vsel %vm452_vm0, %v1317_v11, 0  ;;  %v313_v13 = vld [vmem:[%s2096_s2 + $0x18] sm:$0xff]  ;;  %v311_v14 = vld [vmem:[%s2096_s2 + $0x8] sm:$0xff] }
  0x24   : > { %1378 = vmatpush.bf16.xpose.msra.mxu2 %v493_v1  ;;  %1379 = vmatpush.bf16.xpose.msra.mxu3 %v493_v1  ;;  %v1316_v15 = vld [vmem:[%s1766_s9 + $0x10] sm:$0xff]  ;;  %v317_v17 = vld [vmem:[%s2096_s2 + $0x38] sm:$0xff]  ;;  %v1315_v19 = vld [vmem:[%s1766_s9 + $0x8] sm:$0xff] }
  0x25   : > { %334 = vperm.xlu1 %1486, %v312_v7   ;;  %324 = vperm.xlu0 %1485, %v310_v8   ;;  %v478_v16 = vsel %vm452_vm0, %v1316_v15, 0  ;;  %v316_v18 = vld [vmem:[%s2096_s2 + $0x30] sm:$0xff]  ;;  %v475_v20 = vsel %vm452_vm0, %v1315_v19, 0  ;;  %v314_v21 = vld [vmem:[%s2096_s2 + $0x20] sm:$0xff]  ;;  %v319_v23 = vld [vmem:[%s2096_s2 + $0x48] sm:$0xff] }
  0x26   : > { %1487 = vset.pattern.permute.xlu2 %v1649_v9  ;;  %v320_v22 = vld [vmem:[%s2096_s2 + $0x50] sm:$0xff]  ;;  %v1314_v24 = vld [vmem:[%s1766_s9] sm:$0xff]  ;;  %v315_v26 = vld [vmem:[%s2096_s2 + $0x28] sm:$0xff] }
  0x27   : > { %344 = vperm.xlu2 %1487, %v314_v21   ;;  %v472_v25 = vsel %vm452_vm0, %v1314_v24, 0  ;;  %v1322_v27 = vld [vmem:[%s2109_s1] sm:$0xff]  ;;  %v1323_v28 = vld [vmem:[%s2109_s1 + $0x8] sm:$0xff]  ;;  %v1324_v29 = vld [vmem:[%s2109_s1 + $0x10] sm:$0xff] }
  0x28   : > { %v1326_v30 = vld [vmem:[%s2109_s1 + $0x20] sm:$0xff]  ;;  %v321_v32 = vld [vmem:[%s2096_s2 + $0x58] sm:$0xff]  ;;  %v1327_v34 = vld [vmem:[%s2109_s1 + $0x28] sm:$0xff] }
  0x29   : > { %v318_v31 = vld [vmem:[%s2096_s2 + $0x40] sm:$0xff]  ;;  %v1325_v33 = vld [vmem:[%s2109_s1 + $0x18] sm:$0xff] }
  0x2b   : > { %496 = vmatpush.bf16.xpose.msra.mxu0 %v490_v3  ;;  %1380 = vmatpush.bf16.xpose.msra.mxu1 %v490_v3 }
  0x2c   : > { %1381 = vmatpush.bf16.xpose.msra.mxu2 %v490_v3  ;;  %1382 = vmatpush.bf16.xpose.msra.mxu3 %v490_v3 }
  0x2d   : > { %339 = vperm.xlu1 %1486, %v313_v13   ;;  %329 = vperm.xlu0 %1485, %v311_v14  }
  0x2f   : > { %349 = vperm.xlu2 %1487, %v315_v26  }
  0x33   : > { %497 = vmatpush.bf16.xpose.msra.mxu0 %v487_v5  ;;  %1383 = vmatpush.bf16.xpose.msra.mxu1 %v487_v5 }
  0x34   : > { %1384 = vmatpush.bf16.xpose.msra.mxu2 %v487_v5  ;;  %1385 = vmatpush.bf16.xpose.msra.mxu3 %v487_v5 }
  0x35   : > { %359 = vperm.xlu1 %1486, %v317_v17   ;;  %354 = vperm.xlu0 %1485, %v316_v18  }
  0x37   : > { %364 = vperm.xlu2 %1487, %v318_v31  }
  0x3b   : > { %498 = vmatpush.bf16.xpose.msra.mxu0 %v484_v10  ;;  %1386 = vmatpush.bf16.xpose.msra.mxu1 %v484_v10 }
  0x3c   : > { %1387 = vmatpush.bf16.xpose.msra.mxu2 %v484_v10  ;;  %1388 = vmatpush.bf16.xpose.msra.mxu3 %v484_v10 }
  0x3d   : > { %374 = vperm.xlu1 %1486, %v320_v22   ;;  %369 = vperm.xlu0 %1485, %v319_v23  }
  0x3f   : > { %379 = vperm.xlu2 %1487, %v321_v32  }
  0x43   : > { %499 = vmatpush.bf16.xpose.msra.mxu0 %v481_v12  ;;  %1389 = vmatpush.bf16.xpose.msra.mxu1 %v481_v12 }
  0x44   : > { %1390 = vmatpush.bf16.xpose.msra.mxu2 %v481_v12  ;;  %1391 = vmatpush.bf16.xpose.msra.mxu3 %v481_v12 }
  0x4b   : > { %500 = vmatpush.bf16.xpose.msra.mxu0 %v478_v16  ;;  %1392 = vmatpush.bf16.xpose.msra.mxu1 %v478_v16 }
  0x4c   : > { %1393 = vmatpush.bf16.xpose.msra.mxu2 %v478_v16  ;;  %1394 = vmatpush.bf16.xpose.msra.mxu3 %v478_v16 }
  0x53   : > { %501 = vmatpush.bf16.xpose.msra.mxu0 %v475_v20  ;;  %1395 = vmatpush.bf16.xpose.msra.mxu1 %v475_v20 }
  0x54   : > { %1396 = vmatpush.bf16.xpose.msra.mxu2 %v475_v20  ;;  %1397 = vmatpush.bf16.xpose.msra.mxu3 %v475_v20 }
  0x5b   : > { %502 = vmatpush.bf16.xpose.msra.mxu0 %v472_v25  ;;  %1398 = vmatpush.bf16.xpose.msra.mxu1 %v472_v25 }
  0x5c   : > { %1399 = vmatpush.bf16.xpose.msra.mxu2 %v472_v25  ;;  %1400 = vmatpush.bf16.xpose.msra.mxu3 %v472_v25 }
  0x62   : > { %1262 = vmatmul.msk.bf16.vlgmr.msra.gmra.mxu0 %vm452_vm0, %v1322_v27  ;;  %1263 = vmatmul.msk.bf16.vlgmr.msra.gmra.mxu1 %vm452_vm0, %v1323_v28 }
  0x63   : > { %1264 = vmatmul.msk.bf16.vlgmr.msra.gmra.mxu2 %vm452_vm0, %v1324_v29  ;;  %1266 = vmatmul.msk.bf16.vlgmr.msra.gmra.mxu3 %vm452_vm0, %v1326_v30 }
  0x73   : > { %1265 = vmatmul.msk.bf16.gmra.mxu2 %vm452_vm0, %v1325_v33  ;;  %1267 = vmatmul.msk.bf16.gmra.mxu3 %vm452_vm0, %v1327_v34 }
  0x81   : > { %v345_v36 = vpop.permute.xlu2 %344 }
  0x89   : > { %v350_v39 = vpop.permute.xlu2 %349 }
  0x91   : > { %v365_v46 = vpop.permute.xlu2 %364 }
  0x97   : > { %v325_v35 = vpop.permute.xlu0 %324  ;;  %v335_v37 = vpop.permute.xlu1 %334 }
  0x99   : > { %v380_v2 = vpop.permute.xlu2 %379 }
  0x9f   : > { %v330_v38 = vpop.permute.xlu0 %329  ;;  %v340_v44 = vpop.permute.xlu1 %339 }
  0xa7   : > { %v355_v45 = vpop.permute.xlu0 %354  ;;  %v360_v55 = vpop.permute.xlu1 %359 }
  0xaf   : > { %v370_v56 = vpop.permute.xlu0 %369  ;;  %v375_v61 = vpop.permute.xlu1 %374 }
  0xdf   : > { %v504_v40 = vpop.f32.mrf.mxu0  ;;  %v509_v41 = vpop.f32.mrf.mxu1 }
  0xe0   : > { %v505_v42 = vadd.f32 %v504_v40, %v325_v35  ;;  %v510_v43 = vadd.f32 %v509_v41, %v335_v37 }
  0xe2   : > { %534 = vst [vmem:[#allocation2] sm:$0xff] %v505_v42 }
  0xe3   : > { %536 = vst [vmem:[#allocation2 + $0x10] sm:$0xff] %v510_v43 }
  0xe6   : > { %v514_v47 = vpop.f32.mrf.mxu2  ;;  %v524_v48 = vpop.f32.mrf.mxu3 }
  0xe7   : > { %v515_v49 = vadd.f32 %v514_v47, %v345_v36  ;;  %v525_v50 = vadd.f32 %v524_v48, %v365_v46  ;;  %v506_v51 = vpop.f32.mrf.mxu0  ;;  %v511_v52 = vpop.f32.mrf.mxu1 }
  0xe8   : > { %v507_v53 = vadd.f32 %v506_v51, %v330_v38  ;;  %v512_v54 = vadd.f32 %v511_v52, %v340_v44 }
  0xe9   : > { %538 = vst [vmem:[#allocation2 + $0x20] sm:$0xff] %v515_v49 }
  0xea   : > { %542 = vst [vmem:[#allocation2 + $0x40] sm:$0xff] %v525_v50 }
  0xeb   : > { %535 = vst [vmem:[#allocation2 + $0x8] sm:$0xff] %v507_v53 }
  0xec   : > { %537 = vst [vmem:[#allocation2 + $0x18] sm:$0xff] %v512_v54 }
  0xee   : > { %v516_v57 = vpop.f32.mrf.mxu2  ;;  %v526_v58 = vpop.f32.mrf.mxu3 }
  0xef   : > { %v517_v59 = vadd.f32 %v516_v57, %v350_v39  ;;  %v527_v60 = vadd.f32 %v526_v58, %v370_v56 }
  0xf1   : > { %539 = vst [vmem:[#allocation2 + $0x28] sm:$0xff] %v517_v59 }
  0xf2   : > { %543 = vst [vmem:[#allocation2 + $0x48] sm:$0xff] %v527_v60 }
  0xf6   : > { %v519_v62 = vpop.f32.mrf.mxu2  ;;  %v529_v63 = vpop.f32.mrf.mxu3 }
  0xf7   : > { %v520_v0 = vadd.f32 %v519_v62, %v355_v45  ;;  %v530_v1 = vadd.f32 %v529_v63, %v375_v61 }
  0xf9   : > { %540 = vst [vmem:[#allocation2 + $0x30] sm:$0xff] %v520_v0 }
  0xfa   : > { %544 = vst [vmem:[#allocation2 + $0x50] sm:$0xff] %v530_v1 }
  0xfe   : > { %v521_v3 = vpop.f32.mrf.mxu2  ;;  %v531_v4 = vpop.f32.mrf.mxu3 }
  0xff   : > { %v522_v5 = vadd.f32 %v521_v3, %v360_v55  ;;  %v532_v6 = vadd.f32 %v531_v4, %v380_v2 }
 0x101   : > { %541 = vst [vmem:[#allocation2 + $0x38] sm:$0xff] %v522_v5 }
 0x102   : > { %545 = vst [vmem:[#allocation2 + $0x58] sm:$0xff] %v532_v6 }
 0x103 PF: > { %s1268_s16 = sshll.u32 %s1631_s24, 3  ;;  %vm589_vm1 = vcmask 64512   ;;  %v703_v24 = vlaneseq  ;;  %p1289_p0 = scmp.ne.s32.totalorder %s1631_s24, 3 }
 0x104   : > { %s1855_s18 = scalar_lea.vmem [#allocation2], %s1268_s16  ;;  %s920_s19 = scalar_lea.vmem [#allocation3], %s1268_s16 }
 0x105   : > { %v704_v26 = vand.u32 127, %v703_v24 }
 0x107   : > { %vm705_vm2 = vcmp.lt.s32.totalorder %v704_v26, 8 }
 0x109   : > { %v548_v7 = vld [vmem:[%s1855_s18] sm:$0xff] }
 0x10a   : > { %v1270_v8 = vld [vmem:[%s1855_s18 + $0x20] sm:$0xff]  ;;  %557 = vxpose.xlu0.b32.start.end [1/1] (short) %v548_v7, 128 }
 0x10b   : > { %653 = vmatpush.msra.mxu0 %v1270_v8  ;;  %1401 = vmatpush.msra.mxu2 %v1270_v8 }
 0x10c   : > { %1402 = vmatpush.msra.mxu3 %v1270_v8 }
 0x1ae   : > { %v573_v9 = vpop.trf.xlu0 }
 0x1af   : > { %1273 = vmatmul.msk.f32.vlgmr.msra.gmra.mxu0 %vm589_vm1, %v573_v9 }
 0x1b6   : > { %v574_v10 = vpop.trf.xlu0 }
 0x1b7   : > { %1274 = vmatmul.msk.f32.gmra.mxu0 %vm589_vm1, %v574_v10 }
 0x1be   : > { %v575_v11 = vpop.trf.xlu0 }
 0x1bf   : > { %1275 = vmatmul.msk.f32.gmra.mxu0 %vm589_vm1, %v575_v11 }
 0x1c6   : > { %v576_v12 = vpop.trf.xlu0 }
 0x1c7   : > { %1276 = vmatmul.msk.f32.gmra.mxu0 %vm589_vm1, %v576_v12 }
 0x1ce   : > { %v577_v13 = vpop.trf.xlu0 }
 0x1cf   : > { %1277 = vmatmul.msk.f32.gmra.mxu0 %vm589_vm1, %v577_v13 }
 0x1d6   : > { %v578_v14 = vpop.trf.xlu0 }
 0x1d7   : > { %1278 = vmatmul.msk.f32.gmra.mxu0 %vm589_vm1, %v578_v14 }
 0x1de   : > { %v579_v15 = vpop.trf.xlu0 }
 0x1df   : > { %1279 = vmatmul.msk.f32.gmra.mxu0 %vm589_vm1, %v579_v15 }
 0x1e6   : > { %v580_v16 = vpop.trf.xlu0 }
 0x1e7   : > { %1280 = vmatmul.msk.f32.vlgmr.msra.gmra.mxu2 %vm589_vm1, %v580_v16 }
 0x1ee   : > { %v581_v17 = vpop.trf.xlu0 }
 0x1ef   : > { %1281 = vmatmul.msk.f32.gmra.mxu2 %vm589_vm1, %v581_v17 }
 0x1f6   : > { %v582_v18 = vpop.trf.xlu0 }
 0x1f7   : > { %1282 = vmatmul.msk.f32.gmra.mxu2 %vm589_vm1, %v582_v18 }
 0x1fe   : > { %v583_v19 = vpop.trf.xlu0 }
 0x1ff   : > { %1283 = vmatmul.msk.f32.gmra.mxu2 %vm589_vm1, %v583_v19 }
 0x206   : > { %v584_v20 = vpop.trf.xlu0 }
 0x207   : > { %1284 = vmatmul.msk.f32.gmra.mxu2 %vm589_vm1, %v584_v20 }
 0x20e   : > { %v585_v21 = vpop.trf.xlu0 }
 0x20f   : > { %1285 = vmatmul.msk.f32.gmra.mxu2 %vm589_vm1, %v585_v21 }
 0x216   : > { %v586_v22 = vpop.trf.xlu0 }
 0x217   : > { %1286 = vmatmul.msk.f32.gmra.mxu2 %vm589_vm1, %v586_v22 }
 0x21e   : > { %v587_v23 = vpop.trf.xlu0 }
 0x21f   : > { %1287 = vmatmul.msk.f32.vlgmr.msra.gmra.mxu3 %vm589_vm1, %v587_v23 }
 0x226   : > { %v588_v25 = vpop.trf.xlu0 }
 0x227   : > { %1288 = vmatmul.msk.f32.gmra.mxu3 %vm589_vm1, %v588_v25 }
 0x22c   : > { %v655_v27 = vpop.f32.mrf.mxu0 }
 0x22d   : > { %v1876_v28 = vsel %vm705_vm2, %v655_v27, -1e+30 }
 0x234   : > { %v658_v33 = vpop.f32.mrf.mxu0 }
 0x235   : > { %v1907_v57 = vsel %vm705_vm2, %v658_v33, -1e+30 }
 0x23c   : > { %v661_v35 = vpop.f32.mrf.mxu0 }
 0x23d   : > { %v1899_v55 = vsel %vm705_vm2, %v661_v35, -1e+30 }
 0x244   : > { %v664_v39 = vpop.f32.mrf.mxu0 }
 0x245   : > { %v711_v52 = vsel %vm705_vm2, %v664_v39, -1e+30 }
 0x24c   : > { %v667_v43 = vpop.f32.mrf.mxu0 }
 0x24d   : > { %v1910_v58 = vsel %vm705_vm2, %v667_v43, -1e+30 }
 0x254   : > { %v670_v49 = vpop.f32.mrf.mxu0 }
 0x255   : > { %v713_v50 = vsel %vm705_vm2, %v670_v49, -1e+30 }
 0x25c   : > { %v673_v54 = vpop.f32.mrf.mxu0 }
 0x25d   : > { %v1902_v56 = vsel %vm705_vm2, %v673_v54, -1e+30 }
 0x26a   : > { %v676_v29 = vpop.f32.mrf.mxu2 }
 0x26b   : > { %v715_v46 = vsel %vm705_vm2, %v676_v29, -1e+30 }
 0x272   : > { %v679_v30 = vpop.f32.mrf.mxu2 }
 0x273   : > { %v1895_v53 = vsel %vm705_vm2, %v679_v30, -1e+30 }
 0x27a   : > { %v682_v31 = vpop.f32.mrf.mxu2 }
 0x27b   : > { %v717_v41 = vsel %vm705_vm2, %v682_v31, -1e+30 }
 0x282   : > { %v685_v32 = vpop.f32.mrf.mxu2 }
 0x283   : > { %v1890_v51 = vsel %vm705_vm2, %v685_v32, -1e+30 }
 0x28a   : > { %v688_v34 = vpop.f32.mrf.mxu2 }
 0x28b   : > { %v719_v38 = vsel %vm705_vm2, %v688_v34, -1e+30 }
 0x292   : > { %v691_v36 = vpop.f32.mrf.mxu2 }
 0x293   : > { %v1879_v37 = vsel %vm705_vm2, %v691_v36, -1e+30 }
 0x294   : > { %748 = vmax.xlane.f32.xlu2 %v1879_v37 }
 0x29a   : > { %v694_v44 = vpop.f32.mrf.mxu2 }
 0x29b   : > { %v721_v47 = vsel %vm705_vm2, %v694_v44, -1e+30 }
 0x29c   : > { %746 = vmax.xlane.f32.xlu2 %v719_v38 }
 0x2a2   : > { %v697_v40 = vpop.f32.mrf.mxu3 }
 0x2a3   : > { %v722_v42 = vsel %vm705_vm2, %v697_v40, -1e+30 }
 0x2a4   : > { %742 = vmax.xlane.f32.xlu2 %v717_v41  ;;  %752 = vmax.xlane.f32.xlu1 %v722_v42 }
 0x2aa   : > { %v700_v45 = vpop.f32.mrf.mxu3 }
 0x2ab   : > { %v723_v48 = vsel %vm705_vm2, %v700_v45, -1e+30 }
 0x2ac   : > { %738 = vmax.xlane.f32.xlu2 %v715_v46  ;;  %750 = vmax.xlane.f32.xlu1 %v721_v47 }
 0x2ad   : > { %754 = vmax.xlane.f32.xlu0 %v723_v48 }
 0x2b4   : > { %734 = vmax.xlane.f32.xlu2 %v713_v50  ;;  %744 = vmax.xlane.f32.xlu1 %v1890_v51 }
 0x2bc   : > { %730 = vmax.xlane.f32.xlu2 %v711_v52  ;;  %740 = vmax.xlane.f32.xlu1 %v1895_v53 }
 0x2c4   : > { %728 = vmax.xlane.f32.xlu2 %v1899_v55  ;;  %736 = vmax.xlane.f32.xlu1 %v1902_v56 }
 0x2cc   : > { %726 = vmax.xlane.f32.xlu2 %v1907_v57  ;;  %732 = vmax.xlane.f32.xlu1 %v1910_v58 }
 0x2d4   : > { %724 = vmax.xlane.f32.xlu2 %v1876_v28 }
 0x307   : > { %v749_v59 = vpop.xlane.xlu2 %748 }
 0x308   : > { %v768_v23 = vsub.f32 %v1879_v37, %v749_v59 }
 0x30a   : > { %v796_v27 = vmul.f32 1.442695, %v768_v23 }
 0x30f   : > { %v747_v60 = vpop.xlane.xlu2 %746 }
 0x310   : > { %v767_v61 = vsub.f32 %v719_v38, %v747_v60 }
 0x312   : > { %v794_v62 = vmul.f32 1.442695, %v767_v61 }
 0x314   : > { %1488 = vpow2.f32 %v794_v62 }
 0x317   : > { %v743_v63 = vpop.xlane.xlu2 %742  ;;  %v753_v0 = vpop.xlane.xlu1 %752 }
 0x318   : > { %v765_v1 = vsub.f32 %v717_v41, %v743_v63  ;;  %v770_v2 = vsub.f32 %v722_v42, %v753_v0 }
 0x31a   : > { %v1915_v3 = vpop.eup %1488  ;;  %v790_v4 = vmul.f32 1.442695, %v765_v1  ;;  %v800_v5 = vmul.f32 1.442695, %v770_v2 }
 0x31b   : > { %826 = vadd.xlane.f32.xlu2 %v1915_v3 }
 0x31c   : > { %1490 = vpow2.f32 %v790_v4 }
 0x31d   : > { %1492 = vpow2.f32 %v800_v5 }
 0x31f   : > { %v739_v6 = vpop.xlane.xlu2 %738  ;;  %v751_v13 = vpop.xlane.xlu1 %750 }
 0x320   : > { %v763_v7 = vsub.f32 %v715_v46, %v739_v6  ;;  %v755_v8 = vpop.xlane.xlu0 %754  ;;  %v769_v15 = vsub.f32 %v721_v47, %v751_v13 }
 0x321   : > { %v771_v9 = vsub.f32 %v723_v48, %v755_v8 }
 0x322   : > { %v1918_v10 = vpop.eup %1490  ;;  %v786_v11 = vmul.f32 1.442695, %v763_v7  ;;  %v798_v19 = vmul.f32 1.442695, %v769_v15 }
 0x323   : > { %v1920_v12 = vpop.eup %1492  ;;  %v802_v14 = vmul.f32 1.442695, %v771_v9  ;;  %822 = vadd.xlane.f32.xlu2 %v1918_v10 }
 0x324   : > { %1494 = vpow2.f32 %v786_v11  ;;  %832 = vadd.xlane.f32.xlu1 %v1920_v12 }
 0x325   : > { %1496 = vpow2.f32 %v802_v14 }
 0x327   : > { %v735_v16 = vpop.xlane.xlu2 %734  ;;  %v745_v22 = vpop.xlane.xlu1 %744 }
 0x328   : > { %v761_v17 = vsub.f32 %v713_v50, %v735_v16  ;;  %v766_v31 = vsub.f32 %v1890_v51, %v745_v22 }
 0x32a   : > { %v1924_v18 = vpop.eup %1494  ;;  %v782_v20 = vmul.f32 1.442695, %v761_v17  ;;  %v792_v35 = vmul.f32 1.442695, %v766_v31 }
 0x32b   : > { %818 = vadd.xlane.f32.xlu2 %v1924_v18  ;;  %v1927_v21 = vpop.eup %1496 }
 0x32c   : > { %1498 = vpow2.f32 %v782_v20  ;;  %834 = vadd.xlane.f32.xlu1 %v1927_v21 }
 0x32d   : > { %1500 = vpow2.f32 %v798_v19 }
 0x32f   : > { %v731_v24 = vpop.xlane.xlu2 %730  ;;  %v741_v32 = vpop.xlane.xlu1 %740 }
 0x330   : > { %v759_v25 = vsub.f32 %v711_v52, %v731_v24  ;;  %v764_v37 = vsub.f32 %v1895_v53, %v741_v32 }
 0x332   : > { %v1931_v26 = vpop.eup %1498  ;;  %v778_v29 = vmul.f32 1.442695, %v759_v25  ;;  %v788_v41 = vmul.f32 1.442695, %v764_v37 }
 0x333   : > { %814 = vadd.xlane.f32.xlu2 %v1931_v26  ;;  %v1934_v30 = vpop.eup %1500 }
 0x334   : > { %1502 = vpow2.f32 %v778_v29  ;;  %830 = vadd.xlane.f32.xlu1 %v1934_v30 }
 0x335   : > { %1504 = vpow2.f32 %v796_v27 }
 0x336   : > { %1506 = vpow2.f32 %v792_v35 }
 0x337   : > { %v729_v33 = vpop.xlane.xlu2 %728  ;;  %v737_v40 = vpop.xlane.xlu1 %736 }
 0x338   : > { %v762_v44 = vsub.f32 %v1902_v56, %v737_v40  ;;  %v758_v52 = vsub.f32 %v1899_v55, %v729_v33 }
 0x33a   : > { %v1938_v34 = vpop.eup %1502  ;;  %v784_v46 = vmul.f32 1.442695, %v762_v44  ;;  %v776_v53 = vmul.f32 1.442695, %v758_v52 }
 0x33b   : > { %810 = vadd.xlane.f32.xlu2 %v1938_v34  ;;  %v1941_v36 = vpop.eup %1504 }
 0x33c   : > { %828 = vadd.xlane.f32.xlu1 %v1941_v36  ;;  %v1946_v43 = vpop.eup %1506 }
 0x33f   : > { %v727_v38 = vpop.xlane.xlu2 %726  ;;  %v733_v47 = vpop.xlane.xlu1 %732 }
 0x340   : > { %v757_v39 = vsub.f32 %v1907_v57, %v727_v38  ;;  %v760_v49 = vsub.f32 %v1910_v58, %v733_v47 }
 0x342   : > { %v774_v42 = vmul.f32 1.442695, %v757_v39  ;;  %v780_v50 = vmul.f32 1.442695, %v760_v49 }
 0x344   : > { %1508 = vpow2.f32 %v774_v42  ;;  %824 = vadd.xlane.f32.xlu1 %v1946_v43 }
 0x345   : > { %1510 = vpow2.f32 %v788_v41 }
 0x346   : > { %1512 = vpow2.f32 %v784_v46 }
 0x347   : > { %1514 = vpow2.f32 %v780_v50  ;;  %v725_v54 = vpop.xlane.xlu2 %724 }
 0x348   : > { %1516 = vpow2.f32 %v776_v53  ;;  %v756_v57 = vsub.f32 %v1876_v28, %v725_v54  ;;  %v1272_v53 = vld [vmem:[%s1855_s18 + $0x40] sm:$0xff] }
 0x34a   : > { %v1950_v45 = vpop.eup %1508  ;;  %v772_v59 = vmul.f32 1.442695, %v756_v57 }
 0x34b   : > { %806 = vadd.xlane.f32.xlu2 %v1950_v45  ;;  %v1953_v48 = vpop.eup %1510 }
 0x34c   : > { %820 = vadd.xlane.f32.xlu1 %v1953_v48  ;;  %v1957_v51 = vpop.eup %1512  ;;  %1518 = vpow2.f32 %v772_v59 }
 0x34d   : > { %v1961_v56 = vpop.eup %1514 }
 0x34e   : > { %v1965_v60 = vpop.eup %1516 }
 0x352   : > { %v1968_v58 = vpop.eup %1518 }
 0x354   : > { %816 = vadd.xlane.f32.xlu1 %v1957_v51 }
 0x35c   : > { %812 = vadd.xlane.f32.xlu1 %v1961_v56 }
 0x364   : > { %808 = vadd.xlane.f32.xlu1 %v1965_v60 }
 0x36c   : > { %804 = vadd.xlane.f32.xlu1 %v1968_v58 }
 0x38e   : > { %v827_v0 = vpop.xlane.xlu2 %826 }
 0x396   : > { %v823_v8 = vpop.xlane.xlu2 %822 }
 0x397   : > { %v833_v55 = vpop.xlane.xlu1 %832 }
 0x398   : > { %1520 = vrcp.f32 %v833_v55 }
 0x39e   : > { %v1521_v62 = vpop.eup %1520  ;;  %v819_v15 = vpop.xlane.xlu2 %818 }
 0x39f   : > { %v835_v61 = vpop.xlane.xlu1 %834  ;;  %v866_v2 = vmul.f32 %v1521_v62, %v1920_v12 }
 0x3a0   : > { %1522 = vrcp.f32 %v835_v61 }
 0x3a6   : > { %v1523_v63 = vpop.eup %1522  ;;  %v815_v24 = vpop.xlane.xlu2 %814 }
 0x3a7   : > { %v831_v1 = vpop.xlane.xlu1 %830  ;;  %v867_v28 = vmul.f32 %v1523_v63, %v1927_v21 }
 0x3a8   : > { %1524 = vrcp.f32 %v831_v1 }
 0x3a9   : > { %900 = vmatpush.xpose.msra.mxu1 %v867_v28  ;;  %v1368_v4 = vpack.c.bf16 %v867_v28, %v866_v2 }
 0x3ab   : > { %1376 = vst [vmem:[%s1773_s8 + $0x38] sm:$0xff] %v1368_v4  }
 0x3ad   : > { %901 = vmatpush.xpose.msra.mxu1 %v866_v2 }
 0x3ae   : > { %v1525_v5 = vpop.eup %1524  ;;  %v811_v33 = vpop.xlane.xlu2 %810 }
 0x3af   : > { %v829_v6 = vpop.xlane.xlu1 %828  ;;  %v865_v7 = vmul.f32 %v1525_v5, %v1934_v30 }
 0x3b0   : > { %1526 = vrcp.f32 %v829_v6 }
 0x3b1   : > { %902 = vmatpush.xpose.msra.mxu1 %v865_v7  ;;  %1528 = vrcp.f32 %v827_v0 }
 0x3b6   : > { %v1527_v9 = vpop.eup %1526 }
 0x3b7   : > { %v825_v11 = vpop.xlane.xlu1 %824  ;;  %v864_v13 = vmul.f32 %v1527_v9, %v1941_v36  ;;  %v1529_v14 = vpop.eup %1528 }
 0x3b8   : > { %1530 = vrcp.f32 %v825_v11  ;;  %v863_v16 = vmul.f32 %v1529_v14, %v1915_v3 }
 0x3b9   : > { %v1363_v12 = vpack.c.bf16 %v865_v7, %v864_v13  ;;  %903 = vmatpush.xpose.msra.mxu1 %v864_v13  ;;  %1532 = vrcp.f32 %v823_v8 }
 0x3bb   : > { %1375 = vst [vmem:[%s1773_s8 + $0x30] sm:$0xff] %v1363_v12  }
 0x3bd   : > { %904 = vmatpush.xpose.msra.mxu1 %v863_v16 }
 0x3be   : > { %v1531_v17 = vpop.eup %1530  ;;  %v807_v40 = vpop.xlane.xlu2 %806 }
 0x3bf   : > { %v821_v19 = vpop.xlane.xlu1 %820  ;;  %v862_v20 = vmul.f32 %v1531_v17, %v1946_v43  ;;  %v1533_v21 = vpop.eup %1532 }
 0x3c0   : > { %1534 = vrcp.f32 %v821_v19  ;;  %v861_v23 = vmul.f32 %v1533_v21, %v1918_v10 }
 0x3c1   : > { %v1358_v22 = vpack.c.bf16 %v863_v16, %v862_v20  ;;  %905 = vmatpush.xpose.msra.mxu1 %v862_v20  ;;  %1536 = vrcp.f32 %v819_v15 }
 0x3c3   : > { %1374 = vst [vmem:[%s1773_s8 + $0x28] sm:$0xff] %v1358_v22  }
 0x3c5   : > { %906 = vmatpush.xpose.msra.mxu1 %v861_v23 }
 0x3c6   : > { %v1535_v25 = vpop.eup %1534 }
 0x3c7   : > { %v817_v27 = vpop.xlane.xlu1 %816  ;;  %v860_v3 = vmul.f32 %v1535_v25, %v1953_v48  ;;  %v1537_v29 = vpop.eup %1536 }
 0x3c8   : > { %1538 = vrcp.f32 %v817_v27  ;;  %v859_v31 = vmul.f32 %v1537_v29, %v1924_v18 }
 0x3c9   : > { %v1353_v30 = vpack.c.bf16 %v861_v23, %v860_v3  ;;  %907 = vmatpush.xpose.msra.mxu1 %v860_v3  ;;  %1540 = vrcp.f32 %v815_v24 }
 0x3cb   : > { %1373 = vst [vmem:[%s1773_s8 + $0x20] sm:$0xff] %v1353_v30  }
 0x3cd   : > { %908 = vmatpush.xpose.msra.mxu1 %v859_v31 }
 0x3ce   : > { %v1539_v32 = vpop.eup %1538 }
 0x3cf   : > { %v813_v35 = vpop.xlane.xlu1 %812  ;;  %v858_v10 = vmul.f32 %v1539_v32, %v1957_v51  ;;  %v1541_v36 = vpop.eup %1540 }
 0x3d0   : > { %1542 = vrcp.f32 %v813_v35  ;;  %v857_v38 = vmul.f32 %v1541_v36, %v1931_v26 }
 0x3d1   : > { %v1348_v37 = vpack.c.bf16 %v859_v31, %v858_v10  ;;  %909 = vmatpush.xpose.msra.mxu1 %v858_v10  ;;  %1544 = vrcp.f32 %v811_v33 }
 0x3d3   : > { %1372 = vst [vmem:[%s1773_s8 + $0x18] sm:$0xff] %v1348_v37  }
 0x3d5   : > { %910 = vmatpush.xpose.msra.mxu1 %v857_v38 }
 0x3d6   : > { %v1543_v39 = vpop.eup %1542 }
 0x3d7   : > { %v809_v41 = vpop.xlane.xlu1 %808  ;;  %v856_v18 = vmul.f32 %v1543_v39, %v1961_v56  ;;  %v1545_v42 = vpop.eup %1544 }
 0x3d8   : > { %1546 = vrcp.f32 %v809_v41  ;;  %v855_v44 = vmul.f32 %v1545_v42, %v1938_v34 }
 0x3d9   : > { %v1343_v43 = vpack.c.bf16 %v857_v38, %v856_v18  ;;  %911 = vmatpush.xpose.msra.mxu1 %v856_v18  ;;  %1548 = vrcp.f32 %v807_v40 }
 0x3db   : > { %1371 = vst [vmem:[%s1773_s8 + $0x10] sm:$0xff] %v1343_v43  }
 0x3dd   : > { %912 = vmatpush.xpose.msra.mxu1 %v855_v44 }
 0x3de   : > { %v1547_v46 = vpop.eup %1546 }
 0x3df   : > { %v805_v26 = vpop.xlane.xlu1 %804  ;;  %v854_v47 = vmul.f32 %v1547_v46, %v1965_v60  ;;  %v1549_v48 = vpop.eup %1548 }
 0x3e0   : > { %1550 = vrcp.f32 %v805_v26  ;;  %v853_v50 = vmul.f32 %v1549_v48, %v1950_v45 }
 0x3e1   : > { %v1338_v49 = vpack.c.bf16 %v855_v44, %v854_v47  ;;  %913 = vmatpush.xpose.msra.mxu1 %v854_v47 }
 0x3e3   : > { %1370 = vst [vmem:[%s1773_s8 + $0x8] sm:$0xff] %v1338_v49  }
 0x3e5   : > { %914 = vmatpush.xpose.msra.mxu1 %v853_v50 }
 0x3e6   : > { %v1551_v51 = vpop.eup %1550 }
 0x3e7   : > { %v852_v52 = vmul.f32 %v1551_v51, %v1968_v58 }
 0x3e9   : > { %v1333_v34 = vpack.c.bf16 %v853_v50, %v852_v52  ;;  %915 = vmatpush.xpose.msra.mxu1 %v852_v52 }
 0x3eb   : > { %1334 = vst [vmem:[%s1773_s8] sm:$0xff] %v1333_v34  }
 0x3ec   : > { %916 = vmatmul.f32.vlgmr.msra.gmra.mxu1 %v1272_v53 }
 0x466   : > { %925 = sbr.rel (%p1289_p0) target bundleno = 1568 (0x620), region = 48 }
 0x469   : > { %v917_v54 = vpop.f32.mrf.mxu1 }
 0x46a   : > { %921 = vst [vmem:[%s920_s19] sm:$0xff] %v917_v54 }
 0x46b   : > { %v1329_v45 = vld [vmem:[%s2097_s3 + $0x8] sm:$0xff]  ;;  %v1328_v60 = vld [vmem:[%s2097_s3] sm:$0xff]  ;;  %vm968_vm3 = vcmask 261120  }
 0x46c   : > { %999 = vmatpush.bf16.msra.mxu0 %v1329_v45  ;;  %1403 = vmatpush.bf16.msra.mxu1 %v1329_v45  ;;  %v1552_v6 = vld [vmem:[%s2098_s4] ss:$0 sm:$0xff] }
 0x46d   : > { %1404 = vmatpush.bf16.msra.mxu2 %v1329_v45  ;;  %1405 = vmatpush.bf16.msra.mxu3 %v1329_v45 }
 0x470   : > { %1000 = vmatpush.bf16.msra.mxu0 %v1328_v60  ;;  %1406 = vmatpush.bf16.msra.mxu1 %v1328_v60 }
 0x471   : > { %v926_v56 = vld [vmem:[#allocation3] sm:$0xff]  ;;  %v927_v57 = vld [vmem:[#allocation3 + $0x8] sm:$0xff]  ;;  %1407 = vmatpush.bf16.msra.mxu2 %v1328_v60  ;;  %1408 = vmatpush.bf16.msra.mxu3 %v1328_v60  ;;  %v928_v58 = vld [vmem:[#allocation3 + $0x10] sm:$0xff] }
 0x472   : > { %v930_v59 = vpack.c.bf16 %v927_v57, %v926_v56  ;;  %v929_v55 = vld [vmem:[#allocation3 + $0x18] sm:$0xff] }
 0x473   : > { %v931_v61 = vpack.c.bf16 %v929_v55, %v928_v58 }
 0x474   : > { %932 = vxpose.xlu0.c.b16.start [1/2] (short) %v930_v59, 128 }
 0x484   : > { %933 = vxpose.xlu0.c.b16.end [2/2] (short) %v931_v61, 128 }
 0x520   : > { %v940_v62 = vpop.trf.xlu0 }
 0x521   : > { %1298 = vmatmul.msk.bf16.vlgmr.msra.gmra.mxu0 %vm968_vm3, %v940_v62 }
 0x530   : > { %v941_v63 = vpop.trf.xlu0 }
 0x531   : > { %1299 = vmatmul.msk.bf16.gmra.mxu0 %vm968_vm3, %v941_v63 }
 0x540   : > { %v942_v0 = vpop.trf.xlu0 }
 0x541   : > { %1300 = vmatmul.msk.bf16.vlgmr.msra.gmra.mxu1 %vm968_vm3, %v942_v0 }
 0x550   : > { %v943_v1 = vpop.trf.xlu0 }
 0x551   : > { %1301 = vmatmul.msk.bf16.gmra.mxu1 %vm968_vm3, %v943_v1 }
 0x560   : > { %v944_v28 = vpop.trf.xlu0 }
 0x561   : > { %1302 = vmatmul.msk.bf16.vlgmr.msra.gmra.mxu2 %vm968_vm3, %v944_v28 }
 0x570   : > { %v945_v2 = vpop.trf.xlu0 }
 0x571   : > { %1303 = vmatmul.msk.bf16.gmra.mxu2 %vm968_vm3, %v945_v2 }
 0x580   : > { %v946_v4 = vpop.trf.xlu0 }
 0x581   : > { %1304 = vmatmul.msk.bf16.vlgmr.msra.gmra.mxu3 %vm968_vm3, %v946_v4 }
 0x590   : > { %v947_v5 = vpop.trf.xlu0 }
 0x591   : > { %1305 = vmatmul.msk.bf16.gmra.mxu3 %vm968_vm3, %v947_v5 }
 0x59e   : > { %v1002_v7 = vpop.f32.mrf.mxu0 }
 0x59f   : > { %v1003_v8 = vadd.f32 %v1552_v6, %v1002_v7 }
 0x5a1   : > { %1042 = vst.msk [vmem:[%s1771_s14] sm:$0xff] %vm968_vm3, %v1003_v8 }
 0x5a6   : > { %v1004_v9 = vpop.f32.mrf.mxu0 }
 0x5a7   : > { %v1005_v11 = vadd.f32 %v1552_v6, %v1004_v9 }
 0x5a9   : > { %1043 = vst.msk [vmem:[%s1771_s14 + $0x8] sm:$0xff] %vm968_vm3, %v1005_v11 }
 0x5ae   : > { %v1007_v13 = vpop.f32.mrf.mxu0 }
 0x5af   : > { %v1008_v14 = vadd.f32 %v1552_v6, %v1007_v13 }
 0x5b1   : > { %1044 = vst.msk [vmem:[%s1771_s14 + $0x10] sm:$0xff] %vm968_vm3, %v1008_v14 }
 0x5b6   : > { %v1009_v12 = vpop.f32.mrf.mxu0 }
 0x5b7   : > { %v1010_v15 = vadd.f32 %v1552_v6, %v1009_v12 }
 0x5b9   : > { %1045 = vst.msk [vmem:[%s1771_s14 + $0x18] sm:$0xff] %vm968_vm3, %v1010_v15 }
 0x5be   : > { %v1012_v16 = vpop.f32.mrf.mxu1 }
 0x5bf   : > { %v1013_v17 = vadd.f32 %v1552_v6, %v1012_v16 }
 0x5c1   : > { %1046 = vst.msk [vmem:[%s1771_s14 + $0x20] sm:$0xff] %vm968_vm3, %v1013_v17 }
 0x5c6   : > { %v1014_v19 = vpop.f32.mrf.mxu1 }
 0x5c7   : > { %v1015_v20 = vadd.f32 %v1552_v6, %v1014_v19 }
 0x5c9   : > { %1047 = vst.msk [vmem:[%s1771_s14 + $0x28] sm:$0xff] %vm968_vm3, %v1015_v20 }
 0x5ce   : > { %v1017_v21 = vpop.f32.mrf.mxu1 }
 0x5cf   : > { %v1018_v22 = vadd.f32 %v1552_v6, %v1017_v21 }
 0x5d1   : > { %1048 = vst.msk [vmem:[%s1771_s14 + $0x30] sm:$0xff] %vm968_vm3, %v1018_v22 }
 0x5d6   : > { %v1019_v23 = vpop.f32.mrf.mxu1 }
 0x5d7   : > { %v1020_v24 = vadd.f32 %v1552_v6, %v1019_v23 }
 0x5d9   : > { %1049 = vst.msk [vmem:[%s1771_s14 + $0x38] sm:$0xff] %vm968_vm3, %v1020_v24 }
 0x5e4   : > { %v1022_v25 = vpop.f32.mrf.mxu2 }
 0x5e5   : > { %v1023_v27 = vadd.f32 %v1552_v6, %v1022_v25 }
 0x5e7   : > { %1050 = vst.msk [vmem:[%s1771_s14 + $0x40] sm:$0xff] %vm968_vm3, %v1023_v27 }
 0x5ec   : > { %v1024_v3 = vpop.f32.mrf.mxu2 }
 0x5ed   : > { %v1025_v29 = vadd.f32 %v1552_v6, %v1024_v3 }
 0x5ef   : > { %1051 = vst.msk [vmem:[%s1771_s14 + $0x48] sm:$0xff] %vm968_vm3, %v1025_v29 }
 0x5f4   : > { %v1027_v30 = vpop.f32.mrf.mxu2 }
 0x5f5   : > { %v1028_v31 = vadd.f32 %v1552_v6, %v1027_v30 }
 0x5f7   : > { %1052 = vst.msk [vmem:[%s1771_s14 + $0x50] sm:$0xff] %vm968_vm3, %v1028_v31 }
 0x5fc   : > { %v1029_v32 = vpop.f32.mrf.mxu2 }
 0x5fd   : > { %v1030_v33 = vadd.f32 %v1552_v6, %v1029_v32 }
 0x5ff   : > { %1053 = vst.msk [vmem:[%s1771_s14 + $0x58] sm:$0xff] %vm968_vm3, %v1030_v33 }
 0x604   : > { %v1032_v35 = vpop.f32.mrf.mxu3 }
 0x605   : > { %v1033_v10 = vadd.f32 %v1552_v6, %v1032_v35 }
 0x607   : > { %1054 = vst.msk [vmem:[%s1771_s14 + $0x60] sm:$0xff] %vm968_vm3, %v1033_v10 }
 0x60c   : > { %v1034_v36 = vpop.f32.mrf.mxu3 }
 0x60d   : > { %v1035_v37 = vadd.f32 %v1552_v6, %v1034_v36 }
 0x60f   : > { %1055 = vst.msk [vmem:[%s1771_s14 + $0x68] sm:$0xff] %vm968_vm3, %v1035_v37 }
 0x614   : > { %v1037_v38 = vpop.f32.mrf.mxu3 }
 0x615   : > { %v1038_v39 = vadd.f32 %v1552_v6, %v1037_v38 }
 0x617   : > { %1056 = vst.msk [vmem:[%s1771_s14 + $0x70] sm:$0xff] %vm968_vm3, %v1038_v39 }
 0x61c   : > { %v1039_v40 = vpop.f32.mrf.mxu3 }
 0x61d   : > { %v1040_v41 = vadd.f32 %v1552_v6, %v1039_v40 }
 0x61f   : > { %1057 = vst.msk [vmem:[%s1771_s14 + $0x78] sm:$0xff] %vm968_vm3, %v1040_v41 }
 0x620 PF: > { %s1307_s17 = sshll.u32 %s1631_s24, 4  ;;  %s1308_s16 = sshll.u32 %s1635_s25, 6 }
 0x621   : > { %s1081_s18 = sshll.u32 %s1773_s8, 4  ;;  %s1078_s19 = sadd.s32 %s1308_s16, %s1307_s17  ;;  %s1082_s18 = int_to_ptr.vmem [resolvable:$true] %s1081_s18 }
 0x622   : > { %s1309_s20 = sshll.u32 %s1078_s19, 2  ;;  %s2110_s13 = sand.u32 1, %s1623_s22  }
 0x623   : > { %s1080_s12 = scalar_lea.hbm %s2100_s6, %s1309_s20  ;;  %s1064_s14 = scalar_lea.sflag [#allocation5], %s2110_s13 }
 0x624   : > { %s1083_s9 = sshll.u32 %s1080_s12, 4  ;;  %s1573_s8 = scalar_lea.hbm %s2100_s6, 512  ;;  %s1084_s9 = int_to_ptr.hbm [resolvable:$true] %s1083_s9 }
 0x625   : > { %s1567_s0 = sshra.s32 %s1084_s9, 4  ;;  %s1568_s0 = int_to_ptr.hbm [resolvable:$true] %s1567_s0 }
 0x626   : > { %s1569_s1 = scalar_lea.hbm %s1568_s0, 64  ;;  %p1574_p5 = scmp.lt.s32.totalorder %s1568_s0, %s2100_s6 }
 0x627   : > { %p1570_p1 = scmp.ne.s32.totalorder %s1568_s0, %s1569_s1  ;;  %p1575_p6 = scmp.lt.s32.totalorder %s1573_s8, %s1569_s1 }
 0x629   : > { %p1571_p2 = pnand %p1570_p1, %p1738_p3  ;;  %p1576_p7 = por %p1575_p6, %p1574_p5 }
 0x62b   : > { %p1572_p4 = pneg %p1571_p2 }
 0x62d   : > { %p1577_p9 = pnand %p1576_p7, %p1572_p4 }
 0x62f   : > { %1580 = shalt.err (!%p1577_p9)
}
 0x630   : > { %s1650_s19 = smov 64   ;;  %s1651_s20 = smov 4  }
 0x631   : > { %1409 = dma.vmem_to_hbm [thread:$0]  (%p1738_p3), %s1082_s18, 1024, %s1084_s9, %s1064_s14, %s1650_s19, %s1650_s19, %s1651_s20  }
 0x632 PF: > { %p1415_p10 = scmp.ge.s32.totalorder %s1647_s28, 2  ;;  %s1106_s29 = sand.u32 1, %s1619_s21  }
 0x633   : > { %s1107_s30 = scalar_lea.sflag [#allocation5], %s1106_s29 }
 0x634   : > { %p1412_p11 = pnand %p1415_p10, %p1747_p8 }
 0x636   : > { %p1413_p12 = pneg %p1412_p11 }
 0x638   : > { %1614 = dma.done.wait (%p1413_p12), %s1107_s30, 1024  }
 0x639   : > { %1616 = vsyncadd (%p1413_p12), %s1107_s30, 4294966272  ;;  %s20_s28 = sadd.s32 1, %s1647_s28   ;;  %s2111_s0 = sld [smem:[#allocation7_spill]] }
 0x63a   : > { %p17_p13 = scmp.ge.s32.totalorder %s20_s28, 10   ;;  %s2112_s21 = smov %s1623_s22 }
 0x63b   : > { %s2113_s22 = smov %s1627_s23  ;;  %s2114_s23 = smov %s1756_s15 }
 0x63c   : > { %s2115_s24 = smov %s1639_s26  ;;  %s2116_s25 = smov %s1643_s27 }
 0x63d   : > { %s2117_s26 = smov %s2120_s7  ;;  %19 = sbr.rel (!%p17_p13) target bundleno = 8 (0x8), region = 99 }
 0x63f   : > { %s2118_s27 = smov %s2111_s0 }
 0x642   :  { %1113 = vsyncpa [#allocation5], 1 }
 0x643   :  { %1115 = vsyncpa [#allocation5 + $0x1], 1 }

</bundles_post_ra>
